<compile_context>
chip_gen: v5e
topology: v5e:2x2
jax: 0.10.0
libtpu: 0.0.40
codegen_flags: <defaults>
</compile_context>

<pallas_src>
import functools

import jax
import jax.numpy as jnp
from jax import lax
from jax.experimental import pallas as pl
from jax.experimental.pallas import tpu as pltpu

HIDDEN_SIZE = 64
NUM_FEATURES = 5
INPUT_SIZE = NUM_FEATURES
NUM_LAYERS = 3


# ----------------------------------------------------------------------------- kernel


def _make_kernel(t_chunk, last_valid, num_layers, hidden):
    L, H = num_layers, hidden

    def _sigmoid(v):
        # tanh-form sigmoid: one EUP op per element, no VPU divide.
        return 0.5 * jnp.tanh(0.5 * v) + 0.5

    def kernel(xp_ref, w_big_ref, b_all_ref, fc_w_ref, fc_b_ref, out_ref,
               h_scr, c_scr):
        # grid = (batch tiles [parallel], time chunks [arbitrary])
        t_id = pl.program_id(1)
        n_t = pl.num_programs(1)

        def wave_step(hs, cs, xp, active):
            """One wavefront iteration: layer l consumes *last iteration's* h of
            layer l-1, so all layers' matmuls are independent.  `active` is a
            static per-layer mask used only for the ramp-up / drain steps."""
            hb = jnp.concatenate([h.astype(jnp.bfloat16) for h in hs], axis=-1)
            gates = jnp.dot(hb, w_big_ref[...],
                            preferred_element_type=jnp.float32) + b_all_ref[...]
            new_hs, new_cs = list(hs), list(cs)
            for l in range(L):
                if not active[l]:
                    continue
                g = gates[:, l * 4 * H:(l + 1) * 4 * H]
                if l == 0:
                    g = g + xp                      # hoisted input projection
                sig = _sigmoid(g[:, :3 * H])        # packed [i, f, o]
                g_g = jnp.tanh(g[:, 3 * H:])        # g gate
                i_g = sig[:, 0 * H:1 * H]
                f_g = sig[:, 1 * H:2 * H]
                o_g = sig[:, 2 * H:3 * H]
                c = f_g * cs[l] + i_g * g_g
                new_cs[l] = c
                new_hs[l] = o_g * jnp.tanh(c)
            return tuple(new_hs), tuple(new_cs)

        def read_state():
            return (tuple(h_scr[l] for l in range(L)),
                    tuple(c_scr[l] for l in range(L)))

        def write_state(hs, cs):
            for l in range(L):
                h_scr[l] = hs[l]
                c_scr[l] = cs[l]

        # ---- ramp-up (first chunk only): fill the layer/time wavefront --------
        @pl.when(t_id == 0)
        def _():
            shape = h_scr.shape[1:]
            hs = tuple(jnp.zeros(shape, jnp.float32) for _ in range(L))
            cs = tuple(jnp.zeros(shape, jnp.float32) for _ in range(L))
            for j in range(L - 1):                  # statically unrolled
                hs, cs = wave_step(hs, cs, xp_ref[j],
                                   tuple(l <= j for l in range(L)))
            write_state(hs, cs)

        # ---- steady state: no per-iteration masking anywhere -------------------
        lo = jnp.where(t_id == 0, L - 1, 0)                    # ramp-up consumed L-1
        hi = jnp.where(t_id == n_t - 1, last_valid, t_chunk)   # partial tail chunk

        hs, cs = read_state()

        def body(s, carry):
            hs_c, cs_c = carry
            return wave_step(hs_c, cs_c, xp_ref[s], (True,) * L)

        hs, cs = lax.fori_loop(lo, hi, body, (hs, cs))
        write_state(hs, cs)

        # ---- drain + classifier head (last chunk only) --------------------------
        @pl.when(t_id == n_t - 1)
        def _():
            hs_d, cs_d = read_state()
            for j in range(1, L):                   # statically unrolled drain
                hs_d, cs_d = wave_step(hs_d, cs_d, None,
                                       tuple(l >= j for l in range(L)))
            h_top = hs_d[L - 1]                     # top layer h at t = T-1
            logit = jnp.sum(h_top * fc_w_ref[...], axis=-1,
                            keepdims=True) + fc_b_ref[...]          # (b_tile, 1)
            out_ref[...] = _sigmoid(logit)

    return kernel


# ----------------------------------------------------------------------------- params


def init_params(key, input_size=INPUT_SIZE, hidden_size=HIDDEN_SIZE,
                num_layers=NUM_LAYERS):
    """Deterministic parameters with PyTorch-style U(-1/sqrt(H), 1/sqrt(H)) init."""
    bound = 1.0 / jnp.sqrt(jnp.float32(hidden_size))
    params = {}
    for l in range(num_layers):
        in_dim = input_size if l == 0 else hidden_size
        key, k1, k2, k3, k4 = jax.random.split(key, 5)
        params[f"weight_ih_l{l}"] = jax.random.uniform(
            k1, (4 * hidden_size, in_dim), jnp.float32, -bound, bound)
        params[f"weight_hh_l{l}"] = jax.random.uniform(
            k2, (4 * hidden_size, hidden_size), jnp.float32, -bound, bound)
        params[f"bias_ih_l{l}"] = jax.random.uniform(
            k3, (4 * hidden_size,), jnp.float32, -bound, bound)
        params[f"bias_hh_l{l}"] = jax.random.uniform(
            k4, (4 * hidden_size,), jnp.float32, -bound, bound)
    key, k1, k2 = jax.random.split(key, 3)
    params["fc_weight"] = jax.random.uniform(
        k1, (1, hidden_size), jnp.float32, -bound, bound)
    params["fc_bias"] = jax.random.uniform(k2, (1,), jnp.float32, -bound, bound)
    return params


def _gate_reorder(w):
    """Reorder the leading 4H axis from PyTorch [i, f, g, o] to packed [i, f, o, g]."""
    i, f, g, o = jnp.split(w, 4, axis=0)
    return jnp.concatenate([i, f, o, g], axis=0)


def _pack_params(params, hidden_size, num_layers):
    """Pack weights into kernel-friendly tensors."""
    H, L = hidden_size, num_layers
    # layer-0 input projection, applied once in the wrapper (off the critical path)
    w_x0 = _gate_reorder(params["weight_ih_l0"]).T.astype(jnp.float32)     # (F, 4H)
    # block-sparse fused recurrent weight: one (L*H, L*4H) MXU pass per wave step
    #   rows  l*H:(l+1)*H, cols l*4H:(l+1)*4H       = W_hh_l^T
    #   rows (l-1)*H:l*H,  cols l*4H:(l+1)*4H       = W_ih_l^T   (l >= 1)
    w_big = jnp.zeros((L * H, L * 4 * H), jnp.float32)
    for l in range(L):
        w_hh = _gate_reorder(params[f"weight_hh_l{l}"]).T                  # (H, 4H)
        w_big = w_big.at[l * H:(l + 1) * H, l * 4 * H:(l + 1) * 4 * H].set(w_hh)
        if l >= 1:
            w_ih = _gate_reorder(params[f"weight_ih_l{l}"]).T              # (H, 4H)
            w_big = w_big.at[(l - 1) * H:l * H,
                             l * 4 * H:(l + 1) * 4 * H].set(w_ih)
    w_big = w_big.astype(jnp.bfloat16)                                     # (3H, 12H)
    b_all = jnp.concatenate(
        [_gate_reorder(params[f"bias_ih_l{l}"] + params[f"bias_hh_l{l}"])
         for l in range(L)]).reshape(1, L * 4 * H).astype(jnp.float32)     # (1, 12H)
    fc_w = params["fc_weight"].reshape(1, H).astype(jnp.float32)           # (1, H)
    fc_b = params["fc_bias"].reshape(1, 1).astype(jnp.float32)             # (1, 1)
    return w_x0, w_big, b_all, fc_w, fc_b


# ----------------------------------------------------------------------------- wrapper


def _choose_batch_tile(batch):
    # Cap tiles at 64 rows (the fused all-layer gate block (b, 12H) f32 is 3x wider
    # than a single layer's, so bigger tiles spill), and prefer >= 2 tiles whenever
    # batch >= 16 so the "parallel" batch axis can shard across v7x's 2 TensorCores.
    if batch >= 16:
        for cand in (64, 32, 16, 8):
            if batch % cand == 0 and batch // cand >= 2:
                return cand
    return batch  # single full-batch tile (always a legal BlockSpec)


def _choose_time_chunk(seq_len, b_tile, hidden, num_layers):
    # keep one double-buffered bf16 activation block around <= 8 MiB total
    bytes_per_step = b_tile * 4 * hidden * 2
    tc = (4 << 20) // bytes_per_step
    return max(num_layers - 1, min(128, seq_len, tc))


@functools.partial(jax.jit,
                   static_argnames=("hidden_size", "num_layers", "time_chunk"))
def lstm_classifier_forward(x, params, hidden_size=HIDDEN_SIZE,
                            num_layers=NUM_LAYERS, time_chunk=None):
    """x: (B, T, num_features) float32 (batch_first, like the torch module)."""
    B, T, _ = x.shape
    H, L = hidden_size, num_layers
    assert T >= max(2, L - 1), "wavefront kernel needs at least max(2, L-1) steps"

    w_x0, w_big, b_all, fc_w, fc_b = _pack_params(params, H, L)

    # Hoisted layer-0 input projection: one time-parallel matmul producing a
    # lane-dense, time-major (T, B, 4H) bf16 stream (no separate transpose pass).
    x_proj = jnp.einsum("btf,fg->tbg", x.astype(jnp.float32),
                        w_x0).astype(jnp.bfloat16)

    b_tile = _choose_batch_tile(B)
    num_b = B // b_tile
    if time_chunk is None:
        t_chunk = _choose_time_chunk(T, b_tile, H, L)
    else:
        t_chunk = max(L - 1, min(int(time_chunk), T))
    num_t = -(-T // t_chunk)
    last_valid = T - (num_t - 1) * t_chunk          # steps in the (partial) last chunk

    kernel = _make_kernel(t_chunk, last_valid, L, H)

    def resident(arr):
        return pl.BlockSpec(arr.shape, lambda bi, ti: (0,) * arr.ndim)

    out = pl.pallas_call(
        kernel,
        out_shape=jax.ShapeDtypeStruct((B, 1), jnp.float32),
        grid_spec=pltpu.PrefetchScalarGridSpec(
            num_scalar_prefetch=0,
            grid=(num_b, num_t),
            in_specs=[
                pl.BlockSpec((t_chunk, b_tile, 4 * H),
                             lambda bi, ti: (ti, bi, 0)),      # streamed activations
                resident(w_big),
                resident(b_all),
                resident(fc_w),
                resident(fc_b),
            ],
            out_specs=pl.BlockSpec((b_tile, 1), lambda bi, ti: (bi, 0)),
            scratch_shapes=[
                pltpu.VMEM((L, b_tile, H), jnp.float32),   # h state (skewed wavefront)
                pltpu.VMEM((L, b_tile, H), jnp.float32),   # c state
            ],
        ),
        compiler_params=pltpu.CompilerParams(
            dimension_semantics=("parallel", "arbitrary"),
            vmem_limit_bytes=32 * 1024 * 1024,
        ),
    )(x_proj, w_big, b_all, fc_w, fc_b)
    return out[:, 0]  # squeeze(1) -> (B,)


# ----------------------------------------------------------------------------- reference


def _reference_forward(x, params, hidden_size=HIDDEN_SIZE, num_layers=NUM_LAYERS):
    """Pure-JAX f32 reference of the same math (PyTorch LSTM semantics)."""
    B, T, _ = x.shape
    H = hidden_size
    inp_seq = x.astype(jnp.float32)
    for l in range(num_layers):
        w_ih = params[f"weight_ih_l{l}"]
        w_hh = params[f"weight_hh_l{l}"]
        bias = params[f"bias_ih_l{l}"] + params[f"bias_hh_l{l}"]
        h = jnp.zeros((B, H), jnp.float32)
        c = jnp.zeros((B, H), jnp.float32)
        outs = []
        for t in range(T):
            gates = inp_seq[:, t, :] @ w_ih.T + h @ w_hh.T + bias
            i_g = jax.nn.sigmoid(gates[:, 0 * H:1 * H])
            f_g = jax.nn.sigmoid(gates[:, 1 * H:2 * H])
            g_g = jnp.tanh(gates[:, 2 * H:3 * H])
            o_g = jax.nn.sigmoid(gates[:, 3 * H:4 * H])
            c = f_g * c + i_g * g_g
            h = o_g * jnp.tanh(c)
            outs.append(h)
        inp_seq = jnp.stack(outs, axis=1)
    logit = inp_seq[:, -1, :] @ params["fc_weight"].T + params["fc_bias"]
    return jax.nn.sigmoid(logit)[:, 0]


if __name__ == "__main__":
    key = jax.random.PRNGKey(0)
    key_p, key_x = jax.random.split(key)

    params = init_params(key_p)

    B, T = 8, 20
    x = jax.random.normal(key_x, (B, T, NUM_FEATURES), jnp.float32)

    # time_chunk=8 -> 3 time chunks (last partial) to exercise the streaming grid,
    # the wavefront ramp-up/drain, cross-chunk scratch state, and the dynamic tail.
    out = lstm_classifier_forward(x, params, time_chunk=8)
    out = jax.block_until_ready(out)
    assert out.shape == (B,), out.shape

    ref = _reference_forward(x, params)
    # bf16 matmul operands / bf16 pre-projected stream (f32 accumulation and state)
    assert jnp.allclose(out, ref, rtol=1e-2, atol=1e-2), (out, ref)

    print("KERNEL_OK")
</pallas_src>

<mosaic_0001>
module attributes {stable_mosaic.version = 11 : i64} {
  func.func @kernel(%arg0: i32, %arg1: i32, %arg2: memref<8x8x256xbf16, #tpu.memory_space<vmem>>, %arg3: memref<192x768xbf16, #tpu.memory_space<vmem>>, %arg4: memref<1x768xf32, #tpu.memory_space<vmem>>, %arg5: memref<1x64xf32, #tpu.memory_space<vmem>>, %arg6: memref<1x1xf32, #tpu.memory_space<vmem>>, %arg7: memref<8x1xf32, #tpu.memory_space<vmem>>, %arg8: memref<3x8x64xf32, #tpu.memory_space<vmem>>, %arg9: memref<3x8x64xf32, #tpu.memory_space<vmem>>) attributes {dimension_semantics = [#tpu.dimension_semantics<parallel>, #tpu.dimension_semantics<arbitrary>], iteration_bounds = array<i64: 1, 3>, scalar_prefetch = 0 : i64, scratch_operands = 2 : i64, tpu.core_type = #tpu.core_type<tc>, window_params = [{transform_indices = @transform_0, window_bounds = array<i64: 8, 8, 256>}, {pipeline_mode = #tpu.pipeline_mode<synchronous>, transform_indices = @transform_1, window_bounds = array<i64: 192, 768>}, {pipeline_mode = #tpu.pipeline_mode<synchronous>, transform_indices = @transform_2, window_bounds = array<i64: 1, 768>}, {pipeline_mode = #tpu.pipeline_mode<synchronous>, transform_indices = @transform_3, window_bounds = array<i64: 1, 64>}, {pipeline_mode = #tpu.pipeline_mode<synchronous>, transform_indices = @transform_4, window_bounds = array<i64: 1, 1>}, {transform_indices = @transform_5, window_bounds = array<i64: 8, 1>}]} {
    %c0_i32 = arith.constant 0 : i32
    %0 = arith.cmpi eq, %arg1, %c0_i32 : i32
    %1 = arith.extui %0 : i1 to i32
    %c0_i32_0 = arith.constant 0 : i32
    %2 = arith.cmpi ne, %1, %c0_i32_0 : i32
    scf.if %2 {
      %cst = arith.constant 0.000000e+00 : f32
      %43 = vector.broadcast %cst : f32 to vector<8x64xf32>
      %cst_39 = arith.constant 0.000000e+00 : f32
      %44 = vector.broadcast %cst_39 : f32 to vector<8x64xf32>
      %cst_40 = arith.constant 0.000000e+00 : f32
      %45 = vector.broadcast %cst_40 : f32 to vector<8x64xf32>
      %cst_41 = arith.constant 0.000000e+00 : f32
      %46 = vector.broadcast %cst_41 : f32 to vector<8x64xf32>
      %cst_42 = arith.constant 0.000000e+00 : f32
      %47 = vector.broadcast %cst_42 : f32 to vector<8x64xf32>
      %cst_43 = arith.constant 0.000000e+00 : f32
      %48 = vector.broadcast %cst_43 : f32 to vector<8x64xf32>
      %c0_44 = arith.constant 0 : index
      %c0_45 = arith.constant 0 : index
      %c0_46 = arith.constant 0 : index
      %49 = vector.load %arg2[%c0_44, %c0_45, %c0_46] : memref<8x8x256xbf16, #tpu.memory_space<vmem>>, vector<1x8x256xbf16>
      %50 = vector.shape_cast %49 : vector<1x8x256xbf16> to vector<8x256xbf16>
      %51 = arith.truncf %43 : vector<8x64xf32> to vector<8x64xbf16>
      %52 = arith.truncf %44 : vector<8x64xf32> to vector<8x64xbf16>
      %53 = arith.truncf %45 : vector<8x64xf32> to vector<8x64xbf16>
      %54 = tpu.concatenate %51, %52, %53 in 1 : vector<8x64xbf16>, vector<8x64xbf16>, vector<8x64xbf16> -> vector<8x192xbf16>
      %c0_47 = arith.constant 0 : index
      %c0_48 = arith.constant 0 : index
      %55 = vector.load %arg3[%c0_47, %c0_48] : memref<192x768xbf16, #tpu.memory_space<vmem>>, vector<192x768xbf16>
      %cst_49 = arith.constant dense<0.000000e+00> : vector<8x768xf32>
      %56 = tpu.matmul %54, %55, %cst_49 {dimension_numbers = #tpu.dot_dimension_numbers<[1], [0], [0], [1], [0, 0, 1, 1], [], []>} : vector<8x192xbf16>, vector<192x768xbf16>, vector<8x768xf32> -> vector<8x768xf32>
      %c0_50 = arith.constant 0 : index
      %c0_51 = arith.constant 0 : index
      %57 = vector.load %arg4[%c0_50, %c0_51] : memref<1x768xf32, #tpu.memory_space<vmem>>, vector<1x768xf32>
      %58 = vector.broadcast %57 : vector<1x768xf32> to vector<8x768xf32>
      %59 = arith.addf %56, %58 : vector<8x768xf32>
      %60 = vector.extract_strided_slice %59 {offsets = [0, 0], sizes = [8, 256], strides = [1, 1]} : vector<8x768xf32> to vector<8x256xf32>
      %61 = arith.extf %50 : vector<8x256xbf16> to vector<8x256xf32>
      %62 = arith.addf %60, %61 : vector<8x256xf32>
      %63 = vector.extract_strided_slice %62 {offsets = [0, 0], sizes = [8, 192], strides = [1, 1]} : vector<8x256xf32> to vector<8x192xf32>
      %cst_52 = arith.constant 5.000000e-01 : f32
      %64 = vector.broadcast %cst_52 : f32 to vector<8x192xf32>
      %65 = arith.mulf %64, %63 : vector<8x192xf32>
      %66 = math.tanh %65 : vector<8x192xf32>
      %cst_53 = arith.constant 5.000000e-01 : f32
      %67 = vector.broadcast %cst_53 : f32 to vector<8x192xf32>
      %68 = arith.mulf %67, %66 : vector<8x192xf32>
      %cst_54 = arith.constant 5.000000e-01 : f32
      %69 = vector.broadcast %cst_54 : f32 to vector<8x192xf32>
      %70 = arith.addf %68, %69 : vector<8x192xf32>
      %71 = vector.extract_strided_slice %62 {offsets = [0, 192], sizes = [8, 64], strides = [1, 1]} : vector<8x256xf32> to vector<8x64xf32>
      %72 = math.tanh %71 : vector<8x64xf32>
      %73 = vector.extract_strided_slice %70 {offsets = [0, 0], sizes = [8, 64], strides = [1, 1]} : vector<8x192xf32> to vector<8x64xf32>
      %74 = vector.extract_strided_slice %70 {offsets = [0, 64], sizes = [8, 64], strides = [1, 1]} : vector<8x192xf32> to vector<8x64xf32>
      %75 = vector.extract_strided_slice %70 {offsets = [0, 128], sizes = [8, 64], strides = [1, 1]} : vector<8x192xf32> to vector<8x64xf32>
      %76 = arith.mulf %74, %46 : vector<8x64xf32>
      %77 = arith.mulf %73, %72 : vector<8x64xf32>
      %78 = arith.addf %76, %77 : vector<8x64xf32>
      %79 = math.tanh %78 : vector<8x64xf32>
      %80 = arith.mulf %75, %79 : vector<8x64xf32>
      %c1_55 = arith.constant 1 : index
      %c0_56 = arith.constant 0 : index
      %c0_57 = arith.constant 0 : index
      %81 = vector.load %arg2[%c1_55, %c0_56, %c0_57] : memref<8x8x256xbf16, #tpu.memory_space<vmem>>, vector<1x8x256xbf16>
      %82 = vector.shape_cast %81 : vector<1x8x256xbf16> to vector<8x256xbf16>
      %83 = arith.truncf %80 : vector<8x64xf32> to vector<8x64xbf16>
      %84 = arith.truncf %44 : vector<8x64xf32> to vector<8x64xbf16>
      %85 = arith.truncf %45 : vector<8x64xf32> to vector<8x64xbf16>
      %86 = tpu.concatenate %83, %84, %85 in 1 : vector<8x64xbf16>, vector<8x64xbf16>, vector<8x64xbf16> -> vector<8x192xbf16>
      %c0_58 = arith.constant 0 : index
      %c0_59 = arith.constant 0 : index
      %87 = vector.load %arg3[%c0_58, %c0_59] : memref<192x768xbf16, #tpu.memory_space<vmem>>, vector<192x768xbf16>
      %cst_60 = arith.constant dense<0.000000e+00> : vector<8x768xf32>
      %88 = tpu.matmul %86, %87, %cst_60 {dimension_numbers = #tpu.dot_dimension_numbers<[1], [0], [0], [1], [0, 0, 1, 1], [], []>} : vector<8x192xbf16>, vector<192x768xbf16>, vector<8x768xf32> -> vector<8x768xf32>
      %c0_61 = arith.constant 0 : index
      %c0_62 = arith.constant 0 : index
      %89 = vector.load %arg4[%c0_61, %c0_62] : memref<1x768xf32, #tpu.memory_space<vmem>>, vector<1x768xf32>
      %90 = vector.broadcast %89 : vector<1x768xf32> to vector<8x768xf32>
      %91 = arith.addf %88, %90 : vector<8x768xf32>
      %92 = vector.extract_strided_slice %91 {offsets = [0, 0], sizes = [8, 256], strides = [1, 1]} : vector<8x768xf32> to vector<8x256xf32>
      %93 = arith.extf %82 : vector<8x256xbf16> to vector<8x256xf32>
      %94 = arith.addf %92, %93 : vector<8x256xf32>
      %95 = vector.extract_strided_slice %94 {offsets = [0, 0], sizes = [8, 192], strides = [1, 1]} : vector<8x256xf32> to vector<8x192xf32>
      %cst_63 = arith.constant 5.000000e-01 : f32
      %96 = vector.broadcast %cst_63 : f32 to vector<8x192xf32>
      %97 = arith.mulf %96, %95 : vector<8x192xf32>
      %98 = math.tanh %97 : vector<8x192xf32>
      %cst_64 = arith.constant 5.000000e-01 : f32
      %99 = vector.broadcast %cst_64 : f32 to vector<8x192xf32>
      %100 = arith.mulf %99, %98 : vector<8x192xf32>
      %cst_65 = arith.constant 5.000000e-01 : f32
      %101 = vector.broadcast %cst_65 : f32 to vector<8x192xf32>
      %102 = arith.addf %100, %101 : vector<8x192xf32>
      %103 = vector.extract_strided_slice %94 {offsets = [0, 192], sizes = [8, 64], strides = [1, 1]} : vector<8x256xf32> to vector<8x64xf32>
      %104 = math.tanh %103 : vector<8x64xf32>
      %105 = vector.extract_strided_slice %102 {offsets = [0, 0], sizes = [8, 64], strides = [1, 1]} : vector<8x192xf32> to vector<8x64xf32>
      %106 = vector.extract_strided_slice %102 {offsets = [0, 64], sizes = [8, 64], strides = [1, 1]} : vector<8x192xf32> to vector<8x64xf32>
      %107 = vector.extract_strided_slice %102 {offsets = [0, 128], sizes = [8, 64], strides = [1, 1]} : vector<8x192xf32> to vector<8x64xf32>
      %108 = arith.mulf %106, %78 : vector<8x64xf32>
      %109 = arith.mulf %105, %104 : vector<8x64xf32>
      %110 = arith.addf %108, %109 : vector<8x64xf32>
      %111 = math.tanh %110 : vector<8x64xf32>
      %112 = arith.mulf %107, %111 : vector<8x64xf32>
      %113 = vector.extract_strided_slice %91 {offsets = [0, 256], sizes = [8, 256], strides = [1, 1]} : vector<8x768xf32> to vector<8x256xf32>
      %114 = vector.extract_strided_slice %113 {offsets = [0, 0], sizes = [8, 192], strides = [1, 1]} : vector<8x256xf32> to vector<8x192xf32>
      %cst_66 = arith.constant 5.000000e-01 : f32
      %115 = vector.broadcast %cst_66 : f32 to vector<8x192xf32>
      %116 = arith.mulf %115, %114 : vector<8x192xf32>
      %117 = math.tanh %116 : vector<8x192xf32>
      %cst_67 = arith.constant 5.000000e-01 : f32
      %118 = vector.broadcast %cst_67 : f32 to vector<8x192xf32>
      %119 = arith.mulf %118, %117 : vector<8x192xf32>
      %cst_68 = arith.constant 5.000000e-01 : f32
      %120 = vector.broadcast %cst_68 : f32 to vector<8x192xf32>
      %121 = arith.addf %119, %120 : vector<8x192xf32>
      %122 = vector.extract_strided_slice %113 {offsets = [0, 192], sizes = [8, 64], strides = [1, 1]} : vector<8x256xf32> to vector<8x64xf32>
      %123 = math.tanh %122 : vector<8x64xf32>
      %124 = vector.extract_strided_slice %121 {offsets = [0, 0], sizes = [8, 64], strides = [1, 1]} : vector<8x192xf32> to vector<8x64xf32>
      %125 = vector.extract_strided_slice %121 {offsets = [0, 64], sizes = [8, 64], strides = [1, 1]} : vector<8x192xf32> to vector<8x64xf32>
      %126 = vector.extract_strided_slice %121 {offsets = [0, 128], sizes = [8, 64], strides = [1, 1]} : vector<8x192xf32> to vector<8x64xf32>
      %127 = arith.mulf %125, %47 : vector<8x64xf32>
      %128 = arith.mulf %124, %123 : vector<8x64xf32>
      %129 = arith.addf %127, %128 : vector<8x64xf32>
      %130 = math.tanh %129 : vector<8x64xf32>
      %131 = arith.mulf %126, %130 : vector<8x64xf32>
      %c0_69 = arith.constant 0 : index
      %c0_70 = arith.constant 0 : index
      %c0_71 = arith.constant 0 : index
      %132 = vector.load %arg8[%c0_69, %c0_70, %c0_71] : memref<3x8x64xf32, #tpu.memory_space<vmem>>, vector<1x8x64xf32>
      %133 = vector.shape_cast %132 : vector<1x8x64xf32> to vector<8x64xf32>
      %134 = vector.shape_cast %112 : vector<8x64xf32> to vector<1x8x64xf32>
      tpu.vector_store %arg8[%c0_69, %c0_70, %c0_71], %134 {strides = array<i32>} : memref<3x8x64xf32, #tpu.memory_space<vmem>>, vector<1x8x64xf32>,
      %c0_72 = arith.constant 0 : index
      %c0_73 = arith.constant 0 : index
      %c0_74 = arith.constant 0 : index
      %135 = vector.load %arg9[%c0_72, %c0_73, %c0_74] : memref<3x8x64xf32, #tpu.memory_space<vmem>>, vector<1x8x64xf32>
      %136 = vector.shape_cast %135 : vector<1x8x64xf32> to vector<8x64xf32>
      %137 = vector.shape_cast %110 : vector<8x64xf32> to vector<1x8x64xf32>
      tpu.vector_store %arg9[%c0_72, %c0_73, %c0_74], %137 {strides = array<i32>} : memref<3x8x64xf32, #tpu.memory_space<vmem>>, vector<1x8x64xf32>,
      %c1_75 = arith.constant 1 : index
      %c0_76 = arith.constant 0 : index
      %c0_77 = arith.constant 0 : index
      %138 = vector.load %arg8[%c1_75, %c0_76, %c0_77] : memref<3x8x64xf32, #tpu.memory_space<vmem>>, vector<1x8x64xf32>
      %139 = vector.shape_cast %138 : vector<1x8x64xf32> to vector<8x64xf32>
      %140 = vector.shape_cast %131 : vector<8x64xf32> to vector<1x8x64xf32>
      tpu.vector_store %arg8[%c1_75, %c0_76, %c0_77], %140 {strides = array<i32>} : memref<3x8x64xf32, #tpu.memory_space<vmem>>, vector<1x8x64xf32>,
      %c1_78 = arith.constant 1 : index
      %c0_79 = arith.constant 0 : index
      %c0_80 = arith.constant 0 : index
      %141 = vector.load %arg9[%c1_78, %c0_79, %c0_80] : memref<3x8x64xf32, #tpu.memory_space<vmem>>, vector<1x8x64xf32>
      %142 = vector.shape_cast %141 : vector<1x8x64xf32> to vector<8x64xf32>
      %143 = vector.shape_cast %129 : vector<8x64xf32> to vector<1x8x64xf32>
      tpu.vector_store %arg9[%c1_78, %c0_79, %c0_80], %143 {strides = array<i32>} : memref<3x8x64xf32, #tpu.memory_space<vmem>>, vector<1x8x64xf32>,
      %c2_81 = arith.constant 2 : index
      %c0_82 = arith.constant 0 : index
      %c0_83 = arith.constant 0 : index
      %144 = vector.load %arg8[%c2_81, %c0_82, %c0_83] : memref<3x8x64xf32, #tpu.memory_space<vmem>>, vector<1x8x64xf32>
      %145 = vector.shape_cast %144 : vector<1x8x64xf32> to vector<8x64xf32>
      %146 = vector.shape_cast %45 : vector<8x64xf32> to vector<1x8x64xf32>
      tpu.vector_store %arg8[%c2_81, %c0_82, %c0_83], %146 {strides = array<i32>} : memref<3x8x64xf32, #tpu.memory_space<vmem>>, vector<1x8x64xf32>,
      %c2_84 = arith.constant 2 : index
      %c0_85 = arith.constant 0 : index
      %c0_86 = arith.constant 0 : index
      %147 = vector.load %arg9[%c2_84, %c0_85, %c0_86] : memref<3x8x64xf32, #tpu.memory_space<vmem>>, vector<1x8x64xf32>
      %148 = vector.shape_cast %147 : vector<1x8x64xf32> to vector<8x64xf32>
      %149 = vector.shape_cast %48 : vector<8x64xf32> to vector<1x8x64xf32>
      tpu.vector_store %arg9[%c2_84, %c0_85, %c0_86], %149 {strides = array<i32>} : memref<3x8x64xf32, #tpu.memory_space<vmem>>, vector<1x8x64xf32>,
    } else {
    }
    %c0_i32_1 = arith.constant 0 : i32
    %3 = arith.cmpi eq, %arg1, %c0_i32_1 : i32
    %c2_i32 = arith.constant 2 : i32
    %c0_i32_2 = arith.constant 0 : i32
    %4 = arith.select %3, %c2_i32, %c0_i32_2 : i32
    %c2_i32_3 = arith.constant 2 : i32
    %5 = arith.cmpi eq, %arg1, %c2_i32_3 : i32
    %c4_i32 = arith.constant 4 : i32
    %c8_i32 = arith.constant 8 : i32
    %6 = arith.select %5, %c4_i32, %c8_i32 : i32
    %c0 = arith.constant 0 : index
    %c0_4 = arith.constant 0 : index
    %c0_5 = arith.constant 0 : index
    %7 = vector.load %arg8[%c0, %c0_4, %c0_5] : memref<3x8x64xf32, #tpu.memory_space<vmem>>, vector<1x8x64xf32>
    %8 = vector.shape_cast %7 : vector<1x8x64xf32> to vector<8x64xf32>
    %c1 = arith.constant 1 : index
    %c0_6 = arith.constant 0 : index
    %c0_7 = arith.constant 0 : index
    %9 = vector.load %arg8[%c1, %c0_6, %c0_7] : memref<3x8x64xf32, #tpu.memory_space<vmem>>, vector<1x8x64xf32>
    %10 = vector.shape_cast %9 : vector<1x8x64xf32> to vector<8x64xf32>
    %c2 = arith.constant 2 : index
    %c0_8 = arith.constant 0 : index
    %c0_9 = arith.constant 0 : index
    %11 = vector.load %arg8[%c2, %c0_8, %c0_9] : memref<3x8x64xf32, #tpu.memory_space<vmem>>, vector<1x8x64xf32>
    %12 = vector.shape_cast %11 : vector<1x8x64xf32> to vector<8x64xf32>
    %c0_10 = arith.constant 0 : index
    %c0_11 = arith.constant 0 : index
    %c0_12 = arith.constant 0 : index
    %13 = vector.load %arg9[%c0_10, %c0_11, %c0_12] : memref<3x8x64xf32, #tpu.memory_space<vmem>>, vector<1x8x64xf32>
    %14 = vector.shape_cast %13 : vector<1x8x64xf32> to vector<8x64xf32>
    %c1_13 = arith.constant 1 : index
    %c0_14 = arith.constant 0 : index
    %c0_15 = arith.constant 0 : index
    %15 = vector.load %arg9[%c1_13, %c0_14, %c0_15] : memref<3x8x64xf32, #tpu.memory_space<vmem>>, vector<1x8x64xf32>
    %16 = vector.shape_cast %15 : vector<1x8x64xf32> to vector<8x64xf32>
    %c2_16 = arith.constant 2 : index
    %c0_17 = arith.constant 0 : index
    %c0_18 = arith.constant 0 : index
    %17 = vector.load %arg9[%c2_16, %c0_17, %c0_18] : memref<3x8x64xf32, #tpu.memory_space<vmem>>, vector<1x8x64xf32>
    %18 = vector.shape_cast %17 : vector<1x8x64xf32> to vector<8x64xf32>
    %19 = arith.subi %6, %4 : i32
    %20 = arith.addi %4, %19 : i32
    %c1_i32 = arith.constant 1 : i32
    %21:6 = scf.for %arg10 = %4 to %20 step %c1_i32 iter_args(%arg11 = %8, %arg12 = %10, %arg13 = %12, %arg14 = %14, %arg15 = %16, %arg16 = %18) -> (vector<8x64xf32>, vector<8x64xf32>, vector<8x64xf32>, vector<8x64xf32>, vector<8x64xf32>, vector<8x64xf32>)  : i32 {
      %43 = arith.index_cast %arg10 : i32 to index
      %c0_39 = arith.constant 0 : index
      %c0_40 = arith.constant 0 : index
      %44 = vector.load %arg2[%43, %c0_39, %c0_40] : memref<8x8x256xbf16, #tpu.memory_space<vmem>>, vector<1x8x256xbf16>
      %45 = vector.shape_cast %44 : vector<1x8x256xbf16> to vector<8x256xbf16>
      %46 = arith.truncf %arg11 : vector<8x64xf32> to vector<8x64xbf16>
      %47 = arith.truncf %arg12 : vector<8x64xf32> to vector<8x64xbf16>
      %48 = arith.truncf %arg13 : vector<8x64xf32> to vector<8x64xbf16>
      %49 = tpu.concatenate %46, %47, %48 in 1 : vector<8x64xbf16>, vector<8x64xbf16>, vector<8x64xbf16> -> vector<8x192xbf16>
      %c0_41 = arith.constant 0 : index
      %c0_42 = arith.constant 0 : index
      %50 = vector.load %arg3[%c0_41, %c0_42] : memref<192x768xbf16, #tpu.memory_space<vmem>>, vector<192x768xbf16>
      %cst = arith.constant dense<0.000000e+00> : vector<8x768xf32>
      %51 = tpu.matmul %49, %50, %cst {dimension_numbers = #tpu.dot_dimension_numbers<[1], [0], [0], [1], [0, 0, 1, 1], [], []>} : vector<8x192xbf16>, vector<192x768xbf16>, vector<8x768xf32> -> vector<8x768xf32>
      %c0_43 = arith.constant 0 : index
      %c0_44 = arith.constant 0 : index
      %52 = vector.load %arg4[%c0_43, %c0_44] : memref<1x768xf32, #tpu.memory_space<vmem>>, vector<1x768xf32>
      %53 = vector.broadcast %52 : vector<1x768xf32> to vector<8x768xf32>
      %54 = arith.addf %51, %53 : vector<8x768xf32>
      %55 = vector.extract_strided_slice %54 {offsets = [0, 0], sizes = [8, 256], strides = [1, 1]} : vector<8x768xf32> to vector<8x256xf32>
      %56 = arith.extf %45 : vector<8x256xbf16> to vector<8x256xf32>
      %57 = arith.addf %55, %56 : vector<8x256xf32>
      %58 = vector.extract_strided_slice %57 {offsets = [0, 0], sizes = [8, 192], strides = [1, 1]} : vector<8x256xf32> to vector<8x192xf32>
      %cst_45 = arith.constant 5.000000e-01 : f32
      %59 = vector.broadcast %cst_45 : f32 to vector<8x192xf32>
      %60 = arith.mulf %59, %58 : vector<8x192xf32>
      %61 = math.tanh %60 : vector<8x192xf32>
      %cst_46 = arith.constant 5.000000e-01 : f32
      %62 = vector.broadcast %cst_46 : f32 to vector<8x192xf32>
      %63 = arith.mulf %62, %61 : vector<8x192xf32>
      %cst_47 = arith.constant 5.000000e-01 : f32
      %64 = vector.broadcast %cst_47 : f32 to vector<8x192xf32>
      %65 = arith.addf %63, %64 : vector<8x192xf32>
      %66 = vector.extract_strided_slice %57 {offsets = [0, 192], sizes = [8, 64], strides = [1, 1]} : vector<8x256xf32> to vector<8x64xf32>
      %67 = math.tanh %66 : vector<8x64xf32>
      %68 = vector.extract_strided_slice %65 {offsets = [0, 0], sizes = [8, 64], strides = [1, 1]} : vector<8x192xf32> to vector<8x64xf32>
      %69 = vector.extract_strided_slice %65 {offsets = [0, 64], sizes = [8, 64], strides = [1, 1]} : vector<8x192xf32> to vector<8x64xf32>
      %70 = vector.extract_strided_slice %65 {offsets = [0, 128], sizes = [8, 64], strides = [1, 1]} : vector<8x192xf32> to vector<8x64xf32>
      %71 = arith.mulf %69, %arg14 : vector<8x64xf32>
      %72 = arith.mulf %68, %67 : vector<8x64xf32>
      %73 = arith.addf %71, %72 : vector<8x64xf32>
      %74 = math.tanh %73 : vector<8x64xf32>
      %75 = arith.mulf %70, %74 : vector<8x64xf32>
      %76 = vector.extract_strided_slice %54 {offsets = [0, 256], sizes = [8, 256], strides = [1, 1]} : vector<8x768xf32> to vector<8x256xf32>
      %77 = vector.extract_strided_slice %76 {offsets = [0, 0], sizes = [8, 192], strides = [1, 1]} : vector<8x256xf32> to vector<8x192xf32>
      %cst_48 = arith.constant 5.000000e-01 : f32
      %78 = vector.broadcast %cst_48 : f32 to vector<8x192xf32>
      %79 = arith.mulf %78, %77 : vector<8x192xf32>
      %80 = math.tanh %79 : vector<8x192xf32>
      %cst_49 = arith.constant 5.000000e-01 : f32
      %81 = vector.broadcast %cst_49 : f32 to vector<8x192xf32>
      %82 = arith.mulf %81, %80 : vector<8x192xf32>
      %cst_50 = arith.constant 5.000000e-01 : f32
      %83 = vector.broadcast %cst_50 : f32 to vector<8x192xf32>
      %84 = arith.addf %82, %83 : vector<8x192xf32>
      %85 = vector.extract_strided_slice %76 {offsets = [0, 192], sizes = [8, 64], strides = [1, 1]} : vector<8x256xf32> to vector<8x64xf32>
      %86 = math.tanh %85 : vector<8x64xf32>
      %87 = vector.extract_strided_slice %84 {offsets = [0, 0], sizes = [8, 64], strides = [1, 1]} : vector<8x192xf32> to vector<8x64xf32>
      %88 = vector.extract_strided_slice %84 {offsets = [0, 64], sizes = [8, 64], strides = [1, 1]} : vector<8x192xf32> to vector<8x64xf32>
      %89 = vector.extract_strided_slice %84 {offsets = [0, 128], sizes = [8, 64], strides = [1, 1]} : vector<8x192xf32> to vector<8x64xf32>
      %90 = arith.mulf %88, %arg15 : vector<8x64xf32>
      %91 = arith.mulf %87, %86 : vector<8x64xf32>
      %92 = arith.addf %90, %91 : vector<8x64xf32>
      %93 = math.tanh %92 : vector<8x64xf32>
      %94 = arith.mulf %89, %93 : vector<8x64xf32>
      %95 = vector.extract_strided_slice %54 {offsets = [0, 512], sizes = [8, 256], strides = [1, 1]} : vector<8x768xf32> to vector<8x256xf32>
      %96 = vector.extract_strided_slice %95 {offsets = [0, 0], sizes = [8, 192], strides = [1, 1]} : vector<8x256xf32> to vector<8x192xf32>
      %cst_51 = arith.constant 5.000000e-01 : f32
      %97 = vector.broadcast %cst_51 : f32 to vector<8x192xf32>
      %98 = arith.mulf %97, %96 : vector<8x192xf32>
      %99 = math.tanh %98 : vector<8x192xf32>
      %cst_52 = arith.constant 5.000000e-01 : f32
      %100 = vector.broadcast %cst_52 : f32 to vector<8x192xf32>
      %101 = arith.mulf %100, %99 : vector<8x192xf32>
      %cst_53 = arith.constant 5.000000e-01 : f32
      %102 = vector.broadcast %cst_53 : f32 to vector<8x192xf32>
      %103 = arith.addf %101, %102 : vector<8x192xf32>
      %104 = vector.extract_strided_slice %95 {offsets = [0, 192], sizes = [8, 64], strides = [1, 1]} : vector<8x256xf32> to vector<8x64xf32>
      %105 = math.tanh %104 : vector<8x64xf32>
      %106 = vector.extract_strided_slice %103 {offsets = [0, 0], sizes = [8, 64], strides = [1, 1]} : vector<8x192xf32> to vector<8x64xf32>
      %107 = vector.extract_strided_slice %103 {offsets = [0, 64], sizes = [8, 64], strides = [1, 1]} : vector<8x192xf32> to vector<8x64xf32>
      %108 = vector.extract_strided_slice %103 {offsets = [0, 128], sizes = [8, 64], strides = [1, 1]} : vector<8x192xf32> to vector<8x64xf32>
      %109 = arith.mulf %107, %arg16 : vector<8x64xf32>
      %110 = arith.mulf %106, %105 : vector<8x64xf32>
      %111 = arith.addf %109, %110 : vector<8x64xf32>
      %112 = math.tanh %111 : vector<8x64xf32>
      %113 = arith.mulf %108, %112 : vector<8x64xf32>
      scf.yield %75, %94, %113, %73, %92, %111 : vector<8x64xf32>, vector<8x64xf32>, vector<8x64xf32>, vector<8x64xf32>, vector<8x64xf32>, vector<8x64xf32>
    }
    %c0_19 = arith.constant 0 : index
    %c0_20 = arith.constant 0 : index
    %c0_21 = arith.constant 0 : index
    %22 = vector.load %arg8[%c0_19, %c0_20, %c0_21] : memref<3x8x64xf32, #tpu.memory_space<vmem>>, vector<1x8x64xf32>
    %23 = vector.shape_cast %22 : vector<1x8x64xf32> to vector<8x64xf32>
    %24 = vector.shape_cast %21#0 : vector<8x64xf32> to vector<1x8x64xf32>
    tpu.vector_store %arg8[%c0_19, %c0_20, %c0_21], %24 {strides = array<i32>} : memref<3x8x64xf32, #tpu.memory_space<vmem>>, vector<1x8x64xf32>,
    %c0_22 = arith.constant 0 : index
    %c0_23 = arith.constant 0 : index
    %c0_24 = arith.constant 0 : index
    %25 = vector.load %arg9[%c0_22, %c0_23, %c0_24] : memref<3x8x64xf32, #tpu.memory_space<vmem>>, vector<1x8x64xf32>
    %26 = vector.shape_cast %25 : vector<1x8x64xf32> to vector<8x64xf32>
    %27 = vector.shape_cast %21#3 : vector<8x64xf32> to vector<1x8x64xf32>
    tpu.vector_store %arg9[%c0_22, %c0_23, %c0_24], %27 {strides = array<i32>} : memref<3x8x64xf32, #tpu.memory_space<vmem>>, vector<1x8x64xf32>,
    %c1_25 = arith.constant 1 : index
    %c0_26 = arith.constant 0 : index
    %c0_27 = arith.constant 0 : index
    %28 = vector.load %arg8[%c1_25, %c0_26, %c0_27] : memref<3x8x64xf32, #tpu.memory_space<vmem>>, vector<1x8x64xf32>
    %29 = vector.shape_cast %28 : vector<1x8x64xf32> to vector<8x64xf32>
    %30 = vector.shape_cast %21#1 : vector<8x64xf32> to vector<1x8x64xf32>
    tpu.vector_store %arg8[%c1_25, %c0_26, %c0_27], %30 {strides = array<i32>} : memref<3x8x64xf32, #tpu.memory_space<vmem>>, vector<1x8x64xf32>,
    %c1_28 = arith.constant 1 : index
    %c0_29 = arith.constant 0 : index
    %c0_30 = arith.constant 0 : index
    %31 = vector.load %arg9[%c1_28, %c0_29, %c0_30] : memref<3x8x64xf32, #tpu.memory_space<vmem>>, vector<1x8x64xf32>
    %32 = vector.shape_cast %31 : vector<1x8x64xf32> to vector<8x64xf32>
    %33 = vector.shape_cast %21#4 : vector<8x64xf32> to vector<1x8x64xf32>
    tpu.vector_store %arg9[%c1_28, %c0_29, %c0_30], %33 {strides = array<i32>} : memref<3x8x64xf32, #tpu.memory_space<vmem>>, vector<1x8x64xf32>,
    %c2_31 = arith.constant 2 : index
    %c0_32 = arith.constant 0 : index
    %c0_33 = arith.constant 0 : index
    %34 = vector.load %arg8[%c2_31, %c0_32, %c0_33] : memref<3x8x64xf32, #tpu.memory_space<vmem>>, vector<1x8x64xf32>
    %35 = vector.shape_cast %34 : vector<1x8x64xf32> to vector<8x64xf32>
    %36 = vector.shape_cast %21#2 : vector<8x64xf32> to vector<1x8x64xf32>
    tpu.vector_store %arg8[%c2_31, %c0_32, %c0_33], %36 {strides = array<i32>} : memref<3x8x64xf32, #tpu.memory_space<vmem>>, vector<1x8x64xf32>,
    %c2_34 = arith.constant 2 : index
    %c0_35 = arith.constant 0 : index
    %c0_36 = arith.constant 0 : index
    %37 = vector.load %arg9[%c2_34, %c0_35, %c0_36] : memref<3x8x64xf32, #tpu.memory_space<vmem>>, vector<1x8x64xf32>
    %38 = vector.shape_cast %37 : vector<1x8x64xf32> to vector<8x64xf32>
    %39 = vector.shape_cast %21#5 : vector<8x64xf32> to vector<1x8x64xf32>
    tpu.vector_store %arg9[%c2_34, %c0_35, %c0_36], %39 {strides = array<i32>} : memref<3x8x64xf32, #tpu.memory_space<vmem>>, vector<1x8x64xf32>,
    %c2_i32_37 = arith.constant 2 : i32
    %40 = arith.cmpi eq, %arg1, %c2_i32_37 : i32
    %41 = arith.extui %40 : i1 to i32
    %c0_i32_38 = arith.constant 0 : i32
    %42 = arith.cmpi ne, %41, %c0_i32_38 : i32
    scf.if %42 {
      %c0_39 = arith.constant 0 : index
      %c0_40 = arith.constant 0 : index
      %c0_41 = arith.constant 0 : index
      %43 = vector.load %arg8[%c0_39, %c0_40, %c0_41] : memref<3x8x64xf32, #tpu.memory_space<vmem>>, vector<1x8x64xf32>
      %44 = vector.shape_cast %43 : vector<1x8x64xf32> to vector<8x64xf32>
      %c1_42 = arith.constant 1 : index
      %c0_43 = arith.constant 0 : index
      %c0_44 = arith.constant 0 : index
      %45 = vector.load %arg8[%c1_42, %c0_43, %c0_44] : memref<3x8x64xf32, #tpu.memory_space<vmem>>, vector<1x8x64xf32>
      %46 = vector.shape_cast %45 : vector<1x8x64xf32> to vector<8x64xf32>
      %c2_45 = arith.constant 2 : index
      %c0_46 = arith.constant 0 : index
      %c0_47 = arith.constant 0 : index
      %47 = vector.load %arg8[%c2_45, %c0_46, %c0_47] : memref<3x8x64xf32, #tpu.memory_space<vmem>>, vector<1x8x64xf32>
      %48 = vector.shape_cast %47 : vector<1x8x64xf32> to vector<8x64xf32>
      %c1_48 = arith.constant 1 : index
      %c0_49 = arith.constant 0 : index
      %c0_50 = arith.constant 0 : index
      %49 = vector.load %arg9[%c1_48, %c0_49, %c0_50] : memref<3x8x64xf32, #tpu.memory_space<vmem>>, vector<1x8x64xf32>
      %50 = vector.shape_cast %49 : vector<1x8x64xf32> to vector<8x64xf32>
      %c2_51 = arith.constant 2 : index
      %c0_52 = arith.constant 0 : index
      %c0_53 = arith.constant 0 : index
      %51 = vector.load %arg9[%c2_51, %c0_52, %c0_53] : memref<3x8x64xf32, #tpu.memory_space<vmem>>, vector<1x8x64xf32>
      %52 = vector.shape_cast %51 : vector<1x8x64xf32> to vector<8x64xf32>
      %53 = arith.truncf %44 : vector<8x64xf32> to vector<8x64xbf16>
      %54 = arith.truncf %46 : vector<8x64xf32> to vector<8x64xbf16>
      %55 = arith.truncf %48 : vector<8x64xf32> to vector<8x64xbf16>
      %56 = tpu.concatenate %53, %54, %55 in 1 : vector<8x64xbf16>, vector<8x64xbf16>, vector<8x64xbf16> -> vector<8x192xbf16>
      %c0_54 = arith.constant 0 : index
      %c0_55 = arith.constant 0 : index
      %57 = vector.load %arg3[%c0_54, %c0_55] : memref<192x768xbf16, #tpu.memory_space<vmem>>, vector<192x768xbf16>
      %cst = arith.constant dense<0.000000e+00> : vector<8x768xf32>
      %58 = tpu.matmul %56, %57, %cst {dimension_numbers = #tpu.dot_dimension_numbers<[1], [0], [0], [1], [0, 0, 1, 1], [], []>} : vector<8x192xbf16>, vector<192x768xbf16>, vector<8x768xf32> -> vector<8x768xf32>
      %c0_56 = arith.constant 0 : index
      %c0_57 = arith.constant 0 : index
      %59 = vector.load %arg4[%c0_56, %c0_57] : memref<1x768xf32, #tpu.memory_space<vmem>>, vector<1x768xf32>
      %60 = vector.broadcast %59 : vector<1x768xf32> to vector<8x768xf32>
      %61 = arith.addf %58, %60 : vector<8x768xf32>
      %62 = vector.extract_strided_slice %61 {offsets = [0, 256], sizes = [8, 256], strides = [1, 1]} : vector<8x768xf32> to vector<8x256xf32>
      %63 = vector.extract_strided_slice %62 {offsets = [0, 0], sizes = [8, 192], strides = [1, 1]} : vector<8x256xf32> to vector<8x192xf32>
      %cst_58 = arith.constant 5.000000e-01 : f32
      %64 = vector.broadcast %cst_58 : f32 to vector<8x192xf32>
      %65 = arith.mulf %64, %63 : vector<8x192xf32>
      %66 = math.tanh %65 : vector<8x192xf32>
      %cst_59 = arith.constant 5.000000e-01 : f32
      %67 = vector.broadcast %cst_59 : f32 to vector<8x192xf32>
      %68 = arith.mulf %67, %66 : vector<8x192xf32>
      %cst_60 = arith.constant 5.000000e-01 : f32
      %69 = vector.broadcast %cst_60 : f32 to vector<8x192xf32>
      %70 = arith.addf %68, %69 : vector<8x192xf32>
      %71 = vector.extract_strided_slice %62 {offsets = [0, 192], sizes = [8, 64], strides = [1, 1]} : vector<8x256xf32> to vector<8x64xf32>
      %72 = math.tanh %71 : vector<8x64xf32>
      %73 = vector.extract_strided_slice %70 {offsets = [0, 0], sizes = [8, 64], strides = [1, 1]} : vector<8x192xf32> to vector<8x64xf32>
      %74 = vector.extract_strided_slice %70 {offsets = [0, 64], sizes = [8, 64], strides = [1, 1]} : vector<8x192xf32> to vector<8x64xf32>
      %75 = vector.extract_strided_slice %70 {offsets = [0, 128], sizes = [8, 64], strides = [1, 1]} : vector<8x192xf32> to vector<8x64xf32>
      %76 = arith.mulf %74, %50 : vector<8x64xf32>
      %77 = arith.mulf %73, %72 : vector<8x64xf32>
      %78 = arith.addf %76, %77 : vector<8x64xf32>
      %79 = math.tanh %78 : vector<8x64xf32>
      %80 = arith.mulf %75, %79 : vector<8x64xf32>
      %81 = vector.extract_strided_slice %61 {offsets = [0, 512], sizes = [8, 256], strides = [1, 1]} : vector<8x768xf32> to vector<8x256xf32>
      %82 = vector.extract_strided_slice %81 {offsets = [0, 0], sizes = [8, 192], strides = [1, 1]} : vector<8x256xf32> to vector<8x192xf32>
      %cst_61 = arith.constant 5.000000e-01 : f32
      %83 = vector.broadcast %cst_61 : f32 to vector<8x192xf32>
      %84 = arith.mulf %83, %82 : vector<8x192xf32>
      %85 = math.tanh %84 : vector<8x192xf32>
      %cst_62 = arith.constant 5.000000e-01 : f32
      %86 = vector.broadcast %cst_62 : f32 to vector<8x192xf32>
      %87 = arith.mulf %86, %85 : vector<8x192xf32>
      %cst_63 = arith.constant 5.000000e-01 : f32
      %88 = vector.broadcast %cst_63 : f32 to vector<8x192xf32>
      %89 = arith.addf %87, %88 : vector<8x192xf32>
      %90 = vector.extract_strided_slice %81 {offsets = [0, 192], sizes = [8, 64], strides = [1, 1]} : vector<8x256xf32> to vector<8x64xf32>
      %91 = math.tanh %90 : vector<8x64xf32>
      %92 = vector.extract_strided_slice %89 {offsets = [0, 0], sizes = [8, 64], strides = [1, 1]} : vector<8x192xf32> to vector<8x64xf32>
      %93 = vector.extract_strided_slice %89 {offsets = [0, 64], sizes = [8, 64], strides = [1, 1]} : vector<8x192xf32> to vector<8x64xf32>
      %94 = vector.extract_strided_slice %89 {offsets = [0, 128], sizes = [8, 64], strides = [1, 1]} : vector<8x192xf32> to vector<8x64xf32>
      %95 = arith.mulf %93, %52 : vector<8x64xf32>
      %96 = arith.mulf %92, %91 : vector<8x64xf32>
      %97 = arith.addf %95, %96 : vector<8x64xf32>
      %98 = math.tanh %97 : vector<8x64xf32>
      %99 = arith.mulf %94, %98 : vector<8x64xf32>
      %100 = arith.truncf %44 : vector<8x64xf32> to vector<8x64xbf16>
      %101 = arith.truncf %80 : vector<8x64xf32> to vector<8x64xbf16>
      %102 = arith.truncf %99 : vector<8x64xf32> to vector<8x64xbf16>
      %103 = tpu.concatenate %100, %101, %102 in 1 : vector<8x64xbf16>, vector<8x64xbf16>, vector<8x64xbf16> -> vector<8x192xbf16>
      %c0_64 = arith.constant 0 : index
      %c0_65 = arith.constant 0 : index
      %104 = vector.load %arg3[%c0_64, %c0_65] : memref<192x768xbf16, #tpu.memory_space<vmem>>, vector<192x768xbf16>
      %cst_66 = arith.constant dense<0.000000e+00> : vector<8x768xf32>
      %105 = tpu.matmul %103, %104, %cst_66 {dimension_numbers = #tpu.dot_dimension_numbers<[1], [0], [0], [1], [0, 0, 1, 1], [], []>} : vector<8x192xbf16>, vector<192x768xbf16>, vector<8x768xf32> -> vector<8x768xf32>
      %c0_67 = arith.constant 0 : index
      %c0_68 = arith.constant 0 : index
      %106 = vector.load %arg4[%c0_67, %c0_68] : memref<1x768xf32, #tpu.memory_space<vmem>>, vector<1x768xf32>
      %107 = vector.broadcast %106 : vector<1x768xf32> to vector<8x768xf32>
      %108 = arith.addf %105, %107 : vector<8x768xf32>
      %109 = vector.extract_strided_slice %108 {offsets = [0, 512], sizes = [8, 256], strides = [1, 1]} : vector<8x768xf32> to vector<8x256xf32>
      %110 = vector.extract_strided_slice %109 {offsets = [0, 0], sizes = [8, 192], strides = [1, 1]} : vector<8x256xf32> to vector<8x192xf32>
      %cst_69 = arith.constant 5.000000e-01 : f32
      %111 = vector.broadcast %cst_69 : f32 to vector<8x192xf32>
      %112 = arith.mulf %111, %110 : vector<8x192xf32>
      %113 = math.tanh %112 : vector<8x192xf32>
      %cst_70 = arith.constant 5.000000e-01 : f32
      %114 = vector.broadcast %cst_70 : f32 to vector<8x192xf32>
      %115 = arith.mulf %114, %113 : vector<8x192xf32>
      %cst_71 = arith.constant 5.000000e-01 : f32
      %116 = vector.broadcast %cst_71 : f32 to vector<8x192xf32>
      %117 = arith.addf %115, %116 : vector<8x192xf32>
      %118 = vector.extract_strided_slice %109 {offsets = [0, 192], sizes = [8, 64], strides = [1, 1]} : vector<8x256xf32> to vector<8x64xf32>
      %119 = math.tanh %118 : vector<8x64xf32>
      %120 = vector.extract_strided_slice %117 {offsets = [0, 0], sizes = [8, 64], strides = [1, 1]} : vector<8x192xf32> to vector<8x64xf32>
      %121 = vector.extract_strided_slice %117 {offsets = [0, 64], sizes = [8, 64], strides = [1, 1]} : vector<8x192xf32> to vector<8x64xf32>
      %122 = vector.extract_strided_slice %117 {offsets = [0, 128], sizes = [8, 64], strides = [1, 1]} : vector<8x192xf32> to vector<8x64xf32>
      %123 = arith.mulf %121, %97 : vector<8x64xf32>
      %124 = arith.mulf %120, %119 : vector<8x64xf32>
      %125 = arith.addf %123, %124 : vector<8x64xf32>
      %126 = math.tanh %125 : vector<8x64xf32>
      %127 = arith.mulf %122, %126 : vector<8x64xf32>
      %c0_72 = arith.constant 0 : index
      %c0_73 = arith.constant 0 : index
      %128 = vector.load %arg5[%c0_72, %c0_73] : memref<1x64xf32, #tpu.memory_space<vmem>>, vector<1x64xf32>
      %129 = vector.broadcast %128 : vector<1x64xf32> to vector<8x64xf32>
      %130 = arith.mulf %127, %129 : vector<8x64xf32>
      %cst_74 = arith.constant dense<0.000000e+00> : vector<8xf32>
      %131 = vector.multi_reduction <add>, %130, %cst_74 [1] : vector<8x64xf32> to vector<8xf32>
      %132 = vector.shape_cast %131 : vector<8xf32> to vector<8x1xf32>
      %c0_75 = arith.constant 0 : index
      %c0_76 = arith.constant 0 : index
      %133 = vector.load %arg6[%c0_75, %c0_76] : memref<1x1xf32, #tpu.memory_space<vmem>>, vector<1x1xf32>
      %134 = vector.broadcast %133 : vector<1x1xf32> to vector<8x1xf32>
      %135 = arith.addf %132, %134 : vector<8x1xf32>
      %cst_77 = arith.constant 5.000000e-01 : f32
      %136 = vector.broadcast %cst_77 : f32 to vector<8x1xf32>
      %137 = arith.mulf %136, %135 : vector<8x1xf32>
      %138 = math.tanh %137 : vector<8x1xf32>
      %cst_78 = arith.constant 5.000000e-01 : f32
      %139 = vector.broadcast %cst_78 : f32 to vector<8x1xf32>
      %140 = arith.mulf %139, %138 : vector<8x1xf32>
      %cst_79 = arith.constant 5.000000e-01 : f32
      %141 = vector.broadcast %cst_79 : f32 to vector<8x1xf32>
      %142 = arith.addf %140, %141 : vector<8x1xf32>
      %c0_80 = arith.constant 0 : index
      %c0_81 = arith.constant 0 : index
      %143 = vector.load %arg7[%c0_80, %c0_81] : memref<8x1xf32, #tpu.memory_space<vmem>>, vector<8x1xf32>
      tpu.vector_store %arg7[%c0_80, %c0_81], %142 {strides = array<i32>} : memref<8x1xf32, #tpu.memory_space<vmem>>, vector<8x1xf32>,
    } else {
    }
    return
  }
  func.func @transform_0(%arg0: i32, %arg1: i32) -> (i32, i32, i32) {
    %c0_i32 = arith.constant 0 : i32
    %c0_i32_0 = arith.constant 0 : i32
    return %arg1, %arg0, %c0_i32 : i32, i32, i32
  }
  func.func @transform_1(%arg0: i32, %arg1: i32) -> (i32, i32) {
    %c0_i32 = arith.constant 0 : i32
    %c0_i32_0 = arith.constant 0 : i32
    %c0_i32_1 = arith.constant 0 : i32
    return %c0_i32, %c0_i32_0 : i32, i32
  }
  func.func @transform_2(%arg0: i32, %arg1: i32) -> (i32, i32) {
    %c0_i32 = arith.constant 0 : i32
    %c0_i32_0 = arith.constant 0 : i32
    %c0_i32_1 = arith.constant 0 : i32
    return %c0_i32, %c0_i32_0 : i32, i32
  }
  func.func @transform_3(%arg0: i32, %arg1: i32) -> (i32, i32) {
    %c0_i32 = arith.constant 0 : i32
    %c0_i32_0 = arith.constant 0 : i32
    %c0_i32_1 = arith.constant 0 : i32
    return %c0_i32, %c0_i32_0 : i32, i32
  }
  func.func @transform_4(%arg0: i32, %arg1: i32) -> (i32, i32) {
    %c0_i32 = arith.constant 0 : i32
    %c0_i32_0 = arith.constant 0 : i32
    %c0_i32_1 = arith.constant 0 : i32
    return %c0_i32, %c0_i32_0 : i32, i32
  }
  func.func @transform_5(%arg0: i32, %arg1: i32) -> (i32, i32) {
    %c0_i32 = arith.constant 0 : i32
    %c0_i32_0 = arith.constant 0 : i32
    return %arg0, %c0_i32 : i32, i32
  }
}

</mosaic_0001>

<bundles_post_ra>
// kernel: lstm_classifier_forward.1
= control target key start
LH: loop header
LB: loop body
LE: loop exit
PB: predicated region body
PF: predicated region fallthrough
CT: control target
= control target key end

     0   :  { %s3529_s20 = smov 0   ;;  %s3531_s21 = smov 0   ;;  %s4881_s0 = inlined_call_operand.vmem [shape: bf16[20,8,256], index: 0, kind: input, shape index: {}]   ;;  %s4882_s1 = inlined_call_operand.vmem [shape: bf16[192,768], index: 1, kind: input, shape index: {}]   ;;  %s4883_s2 = inlined_call_operand.vmem [shape: f32[1,768], index: 2, kind: input, shape index: {}]   ;;  %s4884_s3 = inlined_call_operand.vmem [shape: f32[1,64], index: 3, kind: input, shape index: {}]   ;;  %s4885_s4 = inlined_call_operand.<no memory space> [shape: f32[1,1], index: 4, kind: input, shape index: {}]   ;;  %s4886_s5 = inlined_call_operand.vmem [shape: f32[8,1], index: 5, kind: output, shape index: {}]  }
   0x1   :  { %v10_v0 = vstv %s4885_s4  ;;  %s3533_s22 = smov 0  }
   0x2   :  { %11 = vst [vmem:[#allocation4] sm:$0x1] %v10_v0 }
   0x3 LB: > { %s26_s4 = sadd.s32 1, %s3457_s21  ;;  %p2307_p0 = scmp.ge.s32.totalorder %s3461_s22, 1  ;;  %s3461_s22 = sphi %s3533_s22, %s17_s22   ;;  %s3457_s21 = sphi %s3531_s21, %s4894_s21   ;;  %s3453_s20 = sphi %s3529_s20, %s4893_s20  }
   0x4   : > { %p27_p1 = scmp.ge.s32.totalorder %s26_s4, 3  ;;  %p219_p2 = scmp.lt.s32.totalorder %s3461_s22, 4 }
   0x6   : > { %s4896_s4 = smov (%p27_p1, %s26_s4), 0  ;;  %p220_p3 = pnand %p2307_p0, %p219_p2 }
   0x7   : > { %s2308_s23 = sshll.u32 (!%p220_p3), %s3453_s20, 3  ;;  %p282_p4 = scmp.eq.s32.totalorder (!%p220_p3), %s3453_s20, 0 }
   0x8   : > { %223 = sbr.rel (%p220_p3) target bundleno = 3023 (0xbcf), region = 40  ;;  %p262_p5 = scmp.lt.s32.totalorder (!%p220_p3), %s2308_s23, 19 }
   0x9   : > { %p2311_p6 = scmp.ne.s32.totalorder (!%p220_p3), %s3453_s20, 0 }
   0xd   : > { %s4898_s23 = smov (!%p262_p5, %s2308_s23), 19  ;;  %285 = sbr.rel (%p2311_p6) target bundleno = 1037 (0x40d), region = 44 }
   0xe   : > { %s3007_s24 = sshll.u32 %s4898_s23, 3  ;;  %s3492_s17 = smov (!%p2311_p6), 64  }
   0xf   : > { %s3554_s27 = scalar_lea.vmem %s4881_s0, %s3007_s24 }
  0x12   : > { %v3036_v1 = vld [vmem:[%s4882_s1 + $0x154] sm:$0xf]  ;;  %v2372_v2 = vld [vmem:[%s4882_s1 + $0x168] sm:$0xf0]  ;;  %v3032_v3 = vld [vmem:[%s4882_s1 + $0x124] sm:$0xf] }
  0x13   : > { %v3566_v4 = vor.u32 %v3036_v1, %v2372_v2  ;;  %v2364_v5 = vld [vmem:[%s4882_s1 + $0x138] sm:$0xf0]  ;;  %v3052_v6 = vld [vmem:[%s4882_s1 + $0x214] sm:$0xf]  ;;  %v2404_v7 = vld [vmem:[%s4882_s1 + $0x228] sm:$0xf0] }
  0x14   : > { %v3578_v8 = vor.u32 %v3032_v3, %v2364_v5  ;;  %v3580_v9 = vor.u32 %v3052_v6, %v2404_v7  ;;  %v3048_v10 = vld [vmem:[%s4882_s1 + $0x1e4] sm:$0xf]  ;;  %v2396_v11 = vld [vmem:[%s4882_s1 + $0x1f8] sm:$0xf0]  ;;  %v3028_v12 = vld [vmem:[%s4882_s1 + $0xf4] sm:$0xf] }
  0x15   : > { %496 = vmatpush.bf16.msra.mxu2 %v3566_v4  ;;  %v2356_v13 = vld [vmem:[%s4882_s1 + $0x108] sm:$0xf0]  ;;  %v3595_v14 = vor.u32 %v3048_v10, %v2396_v11  ;;  %v3044_v15 = vld [vmem:[%s4882_s1 + $0x1b4] sm:$0xf]  ;;  %v3024_v18 = vld [vmem:[%s4882_s1 + $0xc4] sm:$0xf] }
  0x16   : > { %513 = vmatpush.bf16.msra.mxu3 %v3580_v9  ;;  %v2388_v16 = vld [vmem:[%s4882_s1 + $0x1c8] sm:$0xf0]  ;;  %v3604_v17 = vor.u32 %v3028_v12, %v2356_v13  ;;  %v2348_v19 = vld [vmem:[%s4882_s1 + $0xd8] sm:$0xf0]  ;;  %v2370_v20 = vld [vmem:[%s4882_s1 + $0x150] sm:$0xf] }
  0x17   : > { %v3038_v21 = vld [vmem:[%s4882_s1 + $0x164] sm:$0xf0]  ;;  %v3619_v22 = vor.u32 %v3044_v15, %v2388_v16  ;;  %v2362_v24 = vld [vmem:[%s4882_s1 + $0x120] sm:$0xf]  ;;  %v3034_v25 = vld [vmem:[%s4882_s1 + $0x134] sm:$0xf0]  ;;  %v3636_v28 = vor.u32 %v3024_v18, %v2348_v19 }
  0x18   : > { %v3621_v23 = vor.u32 %v3038_v21, %v2370_v20  ;;  %v3040_v26 = vld [vmem:[%s4882_s1 + $0x184] sm:$0xf]  ;;  %v2380_v27 = vld [vmem:[%s4882_s1 + $0x198] sm:$0xf0]  ;;  %v3020_v29 = vld [vmem:[%s4882_s1 + $0x94] sm:$0xf]  ;;  %v3645_v31 = vor.u32 %v3034_v25, %v2362_v24 }
  0x19   : > { %497 = vmatpush.bf16.msra.mxu2 %v3578_v8  ;;  %v2340_v30 = vld [vmem:[%s4882_s1 + $0xa8] sm:$0xf0]  ;;  %v2402_v32 = vld [vmem:[%s4882_s1 + $0x210] sm:$0xf]  ;;  %v3030_v34 = vld [vmem:[%s4882_s1 + $0x104] sm:$0xf0]  ;;  %v3660_v36 = vor.u32 %v3040_v26, %v2380_v27 }
  0x1a   : > { %514 = vmatpush.bf16.msra.mxu3 %v3595_v14  ;;  %470 = vmatpush.bf16.msra.mxu0 %v3621_v23  ;;  %v2354_v33 = vld [vmem:[%s4882_s1 + $0xf0] sm:$0xf]  ;;  %v3054_v35 = vld [vmem:[%s4882_s1 + $0x224] sm:$0xf0]  ;;  %v2394_v38 = vld [vmem:[%s4882_s1 + $0x1e0] sm:$0xf]  ;;  %v3669_v40 = vor.u32 %v3020_v29, %v2340_v30 }
  0x1b   : > { %v2403_v37 = vor.u32 %v3054_v35, %v2402_v32  ;;  %v3050_v39 = vld [vmem:[%s4882_s1 + $0x1f4] sm:$0xf0]  ;;  %v3016_v41 = vld [vmem:[%s4882_s1 + $0x64] sm:$0xf]  ;;  %v2355_v42 = vor.u32 %v3030_v34, %v2354_v33  ;;  %v2332_v43 = vld [vmem:[%s4882_s1 + $0x78] sm:$0xf0] }
  0x1c   : > { %v2346_v44 = vld [vmem:[%s4882_s1 + $0xc0] sm:$0xf]  ;;  %v3026_v45 = vld [vmem:[%s4882_s1 + $0xd4] sm:$0xf0]  ;;  %v2395_v46 = vor.u32 %v3050_v39, %v2394_v38  ;;  %v2386_v47 = vld [vmem:[%s4882_s1 + $0x1b0] sm:$0xf]  ;;  %v2335_v49 = vor.u32 %v3016_v41, %v2332_v43 }
  0x1d   : > { %498 = vmatpush.bf16.msra.mxu2 %v3604_v17  ;;  %487 = vmatpush.bf16.msra.mxu1 %v2403_v37  ;;  %v3046_v48 = vld [vmem:[%s4882_s1 + $0x1c4] sm:$0xf0]  ;;  %v3012_v50 = vld [vmem:[%s4882_s1 + $0x34] sm:$0xf]  ;;  %v2347_v51 = vor.u32 %v3026_v45, %v2346_v44  ;;  %v2324_v52 = vld [vmem:[%s4882_s1 + $0x48] sm:$0xf0] }
  0x1e   : > { %515 = vmatpush.bf16.msra.mxu3 %v3619_v22  ;;  %471 = vmatpush.bf16.msra.mxu0 %v3645_v31  ;;  %v3491_v53 = vmov 0   ;;  %v2338_v54 = vld [vmem:[%s4882_s1 + $0x90] sm:$0xf]  ;;  %v3022_v55 = vld [vmem:[%s4882_s1 + $0xa4] sm:$0xf0]  ;;  %v2387_v56 = vor.u32 %v3046_v48, %v2386_v47  ;;  %v2327_v59 = vor.u32 %v3012_v50, %v2324_v52  ;;  %v286_v15 = vld [vmem:[%s3554_s27] sm:$0xff] }
  0x1f   : > { %v2378_v57 = vld [vmem:[%s4882_s1 + $0x180] sm:$0xf]  ;;  %v3042_v58 = vld [vmem:[%s4882_s1 + $0x194] sm:$0xf0]  ;;  %v3008_v60 = vld [vmem:[%s4882_s1 + $0x4] sm:$0xf]  ;;  %v2339_v61 = vor.u32 %v3022_v55, %v2338_v54  ;;  %v523_v20 = vunpack.c.h.bf16 %v286_v15  ;;  %v522_v24 = vunpack.c.l.bf16 %v286_v15 }
  0x20   : > { %v2316_v62 = vld [vmem:[%s4882_s1 + $0x18] sm:$0xf0]  ;;  %v2330_v63 = vld [vmem:[%s4882_s1 + $0x60] sm:$0xf]  ;;  %v3018_v0 = vld [vmem:[%s4882_s1 + $0x74] sm:$0xf0]  ;;  %v2379_v1 = vor.u32 %v3042_v58, %v2378_v57 }
  0x21   : > { %499 = vmatpush.bf16.msra.mxu2 %v3636_v28  ;;  %488 = vmatpush.bf16.msra.mxu1 %v2395_v46  ;;  %v2319_v2 = vor.u32 %v3008_v60, %v2316_v62  ;;  %v2331_v3 = vor.u32 %v3018_v0, %v2330_v63  ;;  %v2322_v5 = vld [vmem:[%s4882_s1 + $0x30] sm:$0xf]  ;;  %v3014_v6 = vld [vmem:[%s4882_s1 + $0x44] sm:$0xf0]  ;;  %v2314_v10 = vld [vmem:[%s4882_s1] sm:$0xf] }
  0x22   : > { %516 = vmatpush.bf16.msra.mxu3 %v3660_v36  ;;  %472 = vmatpush.bf16.msra.mxu0 %v2355_v42  ;;  %v2323_v7 = vor.u32 %v3014_v6, %v2322_v5  ;;  %v3010_v11 = vld [vmem:[%s4882_s1 + $0x14] sm:$0xf0]  ;;  %v3039_v38 = vld [vmem:[%s4882_s1 + $0x16c] sm:$0xf0]  ;;  %v3037_v39 = vld [vmem:[%s4882_s1 + $0x15c] sm:$0xf] }
  0x23   : > { %v2315_v12 = vor.u32 %v3010_v11, %v2314_v10  ;;  %v2469_v41 = vld [vmem:[%s4882_s1 + $0x170] sm:$0xf0]  ;;  %v3035_v43 = vld [vmem:[%s4882_s1 + $0x13c] sm:$0xf0]  ;;  %v3033_v45 = vld [vmem:[%s4882_s1 + $0x12c] sm:$0xf] }
  0x24   : > { %v2472_v44 = vor.u32 %v3037_v39, %v2469_v41  ;;  %v3031_v50 = vld [vmem:[%s4882_s1 + $0x10c] sm:$0xf0]  ;;  %v2453_v52 = vld [vmem:[%s4882_s1 + $0x110] sm:$0xf0]  ;;  %v3027_v57 = vld [vmem:[%s4882_s1 + $0xdc] sm:$0xf0] }
  0x25   : > { %500 = vmatpush.bf16.msra.mxu2 %v3669_v40  ;;  %517 = vmatmul.bf16.vlgmr.msra.gmra.mxu3 %v3491_v53  ;;  %v3025_v58 = vld [vmem:[%s4882_s1 + $0xcc] sm:$0xf]  ;;  %v2435_v62 = vld [vmem:[%s4882_s1 + $0x98] sm:$0xf]  ;;  %v3023_v63 = vld [vmem:[%s4882_s1 + $0xac] sm:$0xf0] }
  0x26   : > { %695 = vmatpush.bf16.msrb.mxu3 %v2403_v37  ;;  %473 = vmatpush.bf16.msra.mxu0 %v2347_v51  ;;  %v2467_v37 = vld [vmem:[%s4882_s1 + $0x158] sm:$0xf]  ;;  %v3021_v0 = vld [vmem:[%s4882_s1 + $0x9c] sm:$0xf]  ;;  %v2427_v5 = vld [vmem:[%s4882_s1 + $0x68] sm:$0xf] }
  0x27   : > { %489 = vmatpush.bf16.msra.mxu1 %v2387_v56  ;;  %v3019_v6 = vld [vmem:[%s4882_s1 + $0x7c] sm:$0xf0]  ;;  %v2429_v10 = vld [vmem:[%s4882_s1 + $0x80] sm:$0xf0]  ;;  %v3013_v15 = vld [vmem:[%s4882_s1 + $0x3c] sm:$0xf] }
  0x28   : > { %v2428_v11 = vor.u32 %v3019_v6, %v2427_v5  ;;  %vm287_vm0 = vcmask 523264   ;;  %v2493_v41 = vld [vmem:[%s4882_s1 + $0x200] sm:$0xf0] }
  0x29   : > { %501 = vmatpush.bf16.msra.mxu2 %v2335_v49 }
  0x2a   : > { %696 = vmatpush.bf16.msrb.mxu3 %v2395_v46  ;;  %474 = vmatpush.bf16.msra.mxu0 %v2339_v61  ;;  %v2461_v46 = vld [vmem:[%s4882_s1 + $0x140] sm:$0xf0] }
  0x2b   : > { %490 = vmatpush.bf16.msra.mxu1 %v2379_v1  ;;  %v2464_v48 = vor.u32 %v3033_v45, %v2461_v46  ;;  %v3045_v45 = vld [vmem:[%s4882_s1 + $0x1bc] sm:$0xf]  ;;  %v2485_v46 = vld [vmem:[%s4882_s1 + $0x1d0] sm:$0xf0] }
  0x2d   : > { %502 = vmatpush.bf16.msra.mxu2 %v2327_v59 }
  0x2e   : > { %697 = vmatpush.bf16.msrb.mxu3 %v2387_v56  ;;  %475 = vmatpush.bf16.msra.mxu0 %v2331_v3  ;;  %v2443_v56 = vld [vmem:[%s4882_s1 + $0xc8] sm:$0xf] }
  0x2f   : > { %678 = vmatpush.bf16.msrb.mxu1 %v3621_v23  ;;  %v2444_v60 = vor.u32 %v3027_v57, %v2443_v56 }
  0x30   : > { %491 = vmatmul.bf16.vlgmr.msra.gmra.mxu1 %v3491_v53 }
  0x31   : > { %503 = vmatpush.bf16.msra.mxu2 %v2319_v2 }
  0x32   : > { %698 = vmatpush.bf16.msrb.mxu3 %v2379_v1  ;;  %476 = vmatpush.bf16.msra.mxu0 %v2323_v7  ;;  %v2437_v1 = vld [vmem:[%s4882_s1 + $0xb0] sm:$0xf0] }
  0x33   : > { %679 = vmatpush.bf16.msrb.mxu1 %v3645_v31 }
  0x34   : > { %504 = vmatmul.bf16.vlgmr.msra.gmra.mxu2 %v3491_v53 }
  0x35   : > { %721 = vmatpush.bf16.msrb.mxu2 %v3580_v9  ;;  %699 = vmatmul.bf16.vlgmr.msrb.gmra.mxu3 %v3491_v53 }
  0x36   : > { %477 = vmatpush.bf16.msra.mxu0 %v2315_v12 }
  0x37   : > { %680 = vmatpush.bf16.msrb.mxu1 %v2355_v42  ;;  %v2459_v42 = vld [vmem:[%s4882_s1 + $0x128] sm:$0xf] }
  0x38   : > { %v2460_v47 = vor.u32 %v3035_v43, %v2459_v42  ;;  %v2483_v43 = vld [vmem:[%s4882_s1 + $0x1b8] sm:$0xf] }
  0x39   : > { %722 = vmatpush.bf16.msrb.mxu2 %v3595_v14  ;;  %478 = vmatmul.bf16.vlgmr.msra.gmra.mxu0 %v3491_v53 }
  0x3a   : > { %704 = vmatpush.bf16.msrb.mxu0 %v3566_v4 }
  0x3b   : > { %681 = vmatpush.bf16.msrb.mxu1 %v2347_v51  ;;  %v3029_v51 = vld [vmem:[%s4882_s1 + $0xfc] sm:$0xf] }
  0x3c   : > { %v2456_v55 = vor.u32 %v3029_v51, %v2453_v52  ;;  %v3041_v51 = vld [vmem:[%s4882_s1 + $0x18c] sm:$0xf]  ;;  %v2477_v52 = vld [vmem:[%s4882_s1 + $0x1a0] sm:$0xf0] }
  0x3d   : > { %723 = vmatpush.bf16.msrb.mxu2 %v3619_v22  ;;  %v2480_v56 = vor.u32 %v3041_v51, %v2477_v52 }
  0x3e   : > { %705 = vmatpush.bf16.msrb.mxu0 %v3578_v8  ;;  %v3754_v8 = vld [vmem:[%s4883_s2] sm:$0x3f] }
  0x3f   : > { %682 = vmatpush.bf16.msrb.mxu1 %v2339_v61  ;;  %v341_v14 = vperm.slane %v3754_v8, 1  ;;  %v340_v16 = vperm.slane %v3754_v8, 0 }
  0x41   : > { %724 = vmatpush.bf16.msrb.mxu2 %v3660_v36 }
  0x42   : > { %706 = vmatpush.bf16.msrb.mxu0 %v3604_v17 }
  0x43   : > { %683 = vmatpush.bf16.msrb.mxu1 %v2331_v3  ;;  %v2440_v3 = vor.u32 %v3021_v0, %v2437_v1 }
  0x44   : > { %725 = vmatmul.bf16.vlgmr.msrb.gmra.mxu2 %v3491_v53 }
  0x45   : > { %756 = vmatpush.bf16.msra.mxu2 %v2472_v44  ;;  %v3047_v44 = vld [vmem:[%s4882_s1 + $0x1cc] sm:$0xf0] }
  0x46   : > { %707 = vmatpush.bf16.msrb.mxu0 %v3636_v28 }
  0x47   : > { %684 = vmatpush.bf16.msrb.mxu1 %v2323_v7  ;;  %v3017_v7 = vld [vmem:[%s4882_s1 + $0x6c] sm:$0xf] }
  0x49   : > { %757 = vmatpush.bf16.msra.mxu2 %v2464_v48  ;;  %v2488_v48 = vor.u32 %v3045_v45, %v2485_v46 }
  0x4a   : > { %708 = vmatpush.bf16.msrb.mxu0 %v3669_v40  ;;  %v2468_v40 = vor.u32 %v3039_v38, %v2467_v37  ;;  %v2491_v37 = vld [vmem:[%s4882_s1 + $0x1e8] sm:$0xf]  ;;  %v3051_v38 = vld [vmem:[%s4882_s1 + $0x1fc] sm:$0xf0] }
  0x4b   : > { %685 = vmatpush.bf16.msrb.mxu1 %v2315_v12  ;;  %v2432_v12 = vor.u32 %v3017_v7, %v2429_v10  ;;  %v2492_v39 = vor.u32 %v3051_v38, %v2491_v37 }
  0x4c   : > { %730 = vmatpush.bf16.msra.mxu3 %v2468_v40  ;;  %v3049_v40 = vld [vmem:[%s4882_s1 + $0x1ec] sm:$0xf] }
  0x4d   : > { %758 = vmatpush.bf16.msra.mxu2 %v2456_v55  ;;  %v2496_v42 = vor.u32 %v3049_v40, %v2493_v41 }
  0x4e   : > { %709 = vmatpush.bf16.msrb.mxu0 %v2335_v49  ;;  %v2451_v49 = vld [vmem:[%s4882_s1 + $0xf8] sm:$0xf] }
  0x4f   : > { %v2452_v54 = vor.u32 %v3031_v50, %v2451_v49  ;;  %v2475_v49 = vld [vmem:[%s4882_s1 + $0x188] sm:$0xf]  ;;  %v3043_v50 = vld [vmem:[%s4882_s1 + $0x19c] sm:$0xf0] }
  0x50   : > { %731 = vmatpush.bf16.msra.mxu3 %v2460_v47  ;;  %v2484_v47 = vor.u32 %v3047_v44, %v2483_v43  ;;  %v2476_v55 = vor.u32 %v3043_v50, %v2475_v49 }
  0x52   : > { %710 = vmatpush.bf16.msrb.mxu0 %v2327_v59  ;;  %v2445_v59 = vld [vmem:[%s4882_s1 + $0xe0] sm:$0xf0] }
  0x53   : > { %v2448_v61 = vor.u32 %v3025_v58, %v2445_v59 }
  0x54   : > { %732 = vmatpush.bf16.msra.mxu3 %v2452_v54 }
  0x55   : > { %759 = vmatpush.bf16.msra.mxu2 %v2448_v61 }
  0x56   : > { %711 = vmatpush.bf16.msrb.mxu0 %v2319_v2  ;;  %v2436_v2 = vor.u32 %v3023_v63, %v2435_v62 }
  0x58   : > { %733 = vmatpush.bf16.msra.mxu3 %v2444_v60 }
  0x59   : > { %760 = vmatpush.bf16.msra.mxu2 %v2440_v3 }
  0x5c   : > { %734 = vmatpush.bf16.msra.mxu3 %v2436_v2 }
  0x5d   : > { %761 = vmatpush.bf16.msra.mxu2 %v2432_v12 }
  0x60   : > { %735 = vmatpush.bf16.msra.mxu3 %v2428_v11 }
  0xa8   : > { %v518_v4 = vpop.f32.mrf.mxu3 }
  0xad   : > { %v492_v9 = vpop.f32.mrf.mxu1 }
  0xb0   : > { %v520_v13 = vpop.f32.mrf.mxu3 }
  0xb5   : > { %v494_v18 = vpop.f32.mrf.mxu1 }
  0xb6   : > { %v479_v21 = vpop.f32.mrf.mxu0 }
  0xb7   : > { %v505_v17 = vpop.f32.mrf.mxu2  ;;  %v480_v23 = vadd.f32 %v479_v21, %v340_v16 }
  0xb8   : > { %v506_v19 = vadd.f32 %v505_v17, %v341_v14  ;;  %v2421_v17 = vld [vmem:[%s4882_s1 + $0x50] sm:$0xf0]  ;;  %v700_v57 = vpop.f32.mrf.mxu3 }
  0xb9   : > { %v493_v26 = vadd.f32 %v492_v9, %v480_v23  ;;  %v3015_v9 = vld [vmem:[%s4882_s1 + $0x4c] sm:$0xf0]  ;;  %v2424_v21 = vor.u32 %v3013_v15, %v2421_v17  ;;  %v2411_v23 = vld [vmem:[%s4882_s1 + $0x8] sm:$0xf] }
  0xba   : > { %v519_v22 = vadd.f32 %v518_v4, %v506_v19  ;;  %v2419_v4 = vld [vmem:[%s4882_s1 + $0x38] sm:$0xf] }
  0xbb   : > { %v524_v27 = vadd.f32 %v522_v24, %v493_v26  ;;  %762 = vmatpush.bf16.msra.mxu2 %v2424_v21  ;;  %v3011_v24 = vld [vmem:[%s4882_s1 + $0x1c] sm:$0xf0]  ;;  %v3009_v26 = vld [vmem:[%s4882_s1 + $0xc] sm:$0xf]  ;;  %v343_v21 = vperm.slane %v3754_v8, 3 }
  0xbc   : > { %v3763_v25 = vadd.f32 %v523_v20, %v519_v22  ;;  %v2420_v20 = vor.u32 %v3015_v9, %v2419_v4 }
  0xbd   : > { %v526_v31 = vmul.f32 0.5, %v524_v27  ;;  %v2412_v27 = vor.u32 %v3011_v24, %v2411_v23 }
  0xbe   : > { %3310 = vtanh.f32 %v3763_v25  ;;  %v481_v29 = vpop.f32.mrf.mxu0  ;;  %736 = vmatpush.bf16.msra.mxu3 %v2420_v20  ;;  %v527_v54 = vmul.f32 0.5, %v3763_v25  ;;  %v2408_v25 = vld [vmem:[%s3554_s27 + $0x8] sm:$0xff]  ;;  %v342_v20 = vperm.slane %v3754_v8, 2 }
  0xbf   : > { %v507_v28 = vpop.f32.mrf.mxu2  ;;  %3312 = vtanh.f32 %v526_v31  ;;  %v3055_v31 = vld [vmem:[%s4882_s1 + $0x22c] sm:$0xf0]  ;;  %v782_v7 = vunpack.c.l.bf16 %v2408_v25  ;;  %v783_v11 = vunpack.c.h.bf16 %v2408_v25 }
  0xc0   : > { %v2413_v28 = vld [vmem:[%s4882_s1 + $0x20] sm:$0xf0]  ;;  %v702_v61 = vpop.f32.mrf.mxu3 }
  0xc1   : > { %v2416_v29 = vor.u32 %v3009_v26, %v2413_v28 }
  0xc2   : > { %737 = vmatpush.bf16.msra.mxu3 %v2412_v27 }
  0xc3   : > { %763 = vmatpush.bf16.msra.mxu2 %v2416_v29 }
  0xc4   : > { %v3311_v30 = vpop.eup %3310 }
  0xc5   : > { %537 = vrot.lane.b32.xlu0 %v3311_v30, %s3492_s17  ;;  %v3313_v32 = vpop.eup %3312  ;;  %v2499_v30 = vld [vmem:[%s4882_s1 + $0x218] sm:$0xf] }
  0xc6   : > { %v530_v33 = vmul.f32 0.5, %v3313_v32  ;;  %v3053_v32 = vld [vmem:[%s4882_s1 + $0x21c] sm:$0xf] }
  0xc7   : > { %v726_v58 = vpop.f32.mrf.mxu2 }
  0xc8   : > { %v532_v34 = vadd.f32 0.5, %v530_v33  ;;  %v2500_v33 = vor.u32 %v3055_v31, %v2499_v30 }
  0xca   : > { %v535_v13 = vmul.f32 0.0, %v532_v34  ;;  %747 = vmatpush.bf16.msra.mxu1 %v2500_v33 }
  0xce   : > { %748 = vmatpush.bf16.msra.mxu1 %v2492_v39 }
  0xcf   : > { %v728_v62 = vpop.f32.mrf.mxu2 }
  0xd2   : > { %749 = vmatpush.bf16.msra.mxu1 %v2484_v47 }
  0xd6   : > { %750 = vmatpush.bf16.msra.mxu1 %v2476_v55 }
 0x137   : > { %v538_v35 = vpop.permute.xlu0 %537 }
 0x138   : > { %v540_v36 = vmul.f32 %v538_v35, %v532_v34  ;;  %v2501_v34 = vld [vmem:[%s4882_s1 + $0x230] sm:$0xf0]  ;;  %v3493_v35 = vmov 0.0  }
 0x139   : > { %853 = vst.msk [vmem:[#allocation2 + $0x10] sm:$0xff] %vm287_vm0, %v3493_v35 }
 0x13a   : > { %542 = vrot.lane.b32.xlu0 %v540_v36, %s3492_s17  ;;  %v2504_v36 = vor.u32 %v3053_v32, %v2501_v34  ;;  %855 = vst.msk [vmem:[#allocation3 + $0x10] sm:$0xff] %vm287_vm0, %v3493_v35 }
 0x13c   : > { %773 = vmatpush.bf16.msra.mxu0 %v2504_v36 }
 0x140   : > { %774 = vmatpush.bf16.msra.mxu0 %v2496_v42 }
 0x144   : > { %775 = vmatpush.bf16.msra.mxu0 %v2488_v48 }
 0x148   : > { %776 = vmatpush.bf16.msra.mxu0 %v2480_v56 }
 0x1ac   : > { %v543_v18 = vpop.permute.xlu0 %542 }
 0x1ad   : > { %v3852_v19 = vadd.f32 %v543_v18, %v535_v13 }
 0x1af   : > { %3314 = vtanh.f32 %v3852_v19 }
 0x1b0   : > { %3316 = vtanh.f32 %v527_v54 }
 0x1b5   : > { %v3315_v22 = vpop.eup %3314 }
 0x1b6   : > { %548 = vrot.lane.b32.xlu1 %v3315_v22, %s3492_s17  ;;  %v3317_v59 = vpop.eup %3316 }
 0x1b7   : > { %v531_v60 = vmul.f32 0.5, %v3317_v59 }
 0x1b9   : > { %v533_v63 = vadd.f32 0.5, %v531_v60 }
 0x228   : > { %v549_v0 = vpop.permute.xlu1 %548 }
 0x229   : > { %v551_v1 = vmul.f32 %v549_v0, %v533_v63 }
 0x22b   : > { %v554_v2 = vpack.c.bf16 %v551_v1, %v551_v1 }
 0x22d   : > { %2505 = vmatmul.msk.bf16.vlgmr.msrb.gmra.mxu1 %vm287_vm0, %v554_v2  ;;  %2506 = vmatmul.msk.bf16.vlgmr.msrb.gmra.mxu0 %vm287_vm0, %v554_v2 }
 0x22e   : > { %2507 = vmatmul.msk.bf16.vlgmr.msra.gmra.mxu3 %vm287_vm0, %v554_v2  ;;  %2508 = vmatmul.msk.bf16.vlgmr.msra.gmra.mxu2 %vm287_vm0, %v554_v2 }
 0x23d   : > { %751 = vmatmul.bf16.vlgmr.msra.gmra.mxu1 %v3491_v53  ;;  %777 = vmatmul.bf16.vlgmr.msra.gmra.mxu0 %v3491_v53 }
 0x2aa   : > { %v687_v3 = vpop.f32.mrf.mxu1  ;;  %v713_v5 = vpop.f32.mrf.mxu0 }
 0x2ab   : > { %v688_v6 = vadd.f32 %v687_v3, %v340_v16  ;;  %v714_v10 = vadd.f32 %v713_v5, %v341_v14 }
 0x2ad   : > { %v701_v12 = vadd.f32 %v700_v57, %v688_v6  ;;  %v727_v4 = vadd.f32 %v726_v58, %v714_v10 }
 0x2af   : > { %v784_v9 = vadd.f32 %v782_v7, %v701_v12  ;;  %v785_v13 = vadd.f32 %v783_v11, %v727_v4 }
 0x2b1   : > { %3318 = vtanh.f32 %v785_v13  ;;  %v739_v15 = vpop.f32.mrf.mxu3  ;;  %v765_v17 = vpop.f32.mrf.mxu2  ;;  %v786_v34 = vmul.f32 0.5, %v784_v9  ;;  %v787_v54 = vmul.f32 0.5, %v785_v13 }
 0x2b2   : > { %v689_v18 = vpop.f32.mrf.mxu1  ;;  %v715_v53 = vpop.f32.mrf.mxu0  ;;  %v740_v16 = vadd.f32 %v739_v15, %v342_v20  ;;  %v766_v23 = vadd.f32 %v765_v17, %v343_v21 }
 0x2b7   : > { %v3319_v22 = vpop.eup %3318 }
 0x2b8   : > { %797 = vrot.lane.b32.xlu1 %v3319_v22, %s3492_s17 }
 0x2b9   : > { %v741_v14 = vpop.f32.mrf.mxu3  ;;  %v767_v24 = vpop.f32.mrf.mxu2 }
 0x2ba   : > { %v752_v26 = vpop.f32.mrf.mxu1  ;;  %v778_v27 = vpop.f32.mrf.mxu0 }
 0x2bb   : > { %v753_v28 = vadd.f32 %v752_v26, %v740_v16  ;;  %v779_v29 = vadd.f32 %v778_v27, %v766_v23 }
 0x2bd   : > { %3320 = vtanh.f32 %v779_v29  ;;  %v812_v33 = vmul.f32 0.5, %v753_v28  ;;  %v813_v52 = vmul.f32 0.5, %v779_v29 }
 0x2bf   : > { %3322 = vtanh.f32 %v812_v33 }
 0x2c0   : > { %3324 = vtanh.f32 %v786_v34 }
 0x2c2   : > { %v780_v30 = vpop.f32.mrf.mxu0  ;;  %v754_v31 = vpop.f32.mrf.mxu1 }
 0x2c3   : > { %v3321_v32 = vpop.eup %3320 }
 0x2c4   : > { %823 = vrot.lane.b32.xlu2 %v3321_v32, %s3492_s17 }
 0x2c5   : > { %v3323_v8 = vpop.eup %3322 }
 0x2c6   : > { %v816_v35 = vmul.f32 0.5, %v3323_v8  ;;  %v3325_v39 = vpop.eup %3324 }
 0x2c7   : > { %v790_v40 = vmul.f32 0.5, %v3325_v39 }
 0x2c8   : > { %v818_v36 = vadd.f32 0.5, %v816_v35 }
 0x2c9   : > { %v792_v41 = vadd.f32 0.5, %v790_v40 }
 0x2ca   : > { %v821_v48 = vmul.f32 0.0, %v818_v36 }
 0x2cb   : > { %v795_v44 = vmul.f32 %v792_v41, %v3852_v19 }
 0x31e   : > { %v824_v37 = vpop.permute.xlu2 %823 }
 0x31f   : > { %v826_v38 = vmul.f32 %v824_v37, %v818_v36 }
 0x321   : > { %828 = vrot.lane.b32.xlu0 %v826_v38, %s3492_s17 }
 0x32a   : > { %v798_v42 = vpop.permute.xlu1 %797 }
 0x32b   : > { %v800_v43 = vmul.f32 %v798_v42, %v792_v41 }
 0x32d   : > { %802 = vrot.lane.b32.xlu2 %v800_v43, %s3492_s17 }
 0x387   : > { %v803_v45 = vpop.permute.xlu2 %802 }
 0x388   : > { %v805_v46 = vadd.f32 %v803_v45, %v795_v44 }
 0x38a   : > { %3326 = vtanh.f32 %v805_v46  ;;  %840 = vrot.lane.b32.xlu0 %v805_v46, %s3492_s17 }
 0x390   : > { %v3327_v47 = vpop.eup %3326 }
 0x391   : > { %808 = vrot.lane.b32.xlu1 %v3327_v47, %s3492_s17 }
 0x393   : > { %v829_v49 = vpop.permute.xlu0 %828 }
 0x394   : > { %v831_v50 = vadd.f32 %v829_v49, %v821_v48 }
 0x396   : > { %3328 = vtanh.f32 %v831_v50 }
 0x397   : > { %3330 = vtanh.f32 %v813_v52 }
 0x398   : > { %3332 = vtanh.f32 %v787_v54 }
 0x399   : > { %847 = vrot.lane.b32.xlu1 %v831_v50, %s3492_s17 }
 0x39c   : > { %v3329_v51 = vpop.eup %3328 }
 0x39d   : > { %834 = vrot.lane.b32.xlu2 %v3329_v51, %s3492_s17  ;;  %v3331_v19 = vpop.eup %3330 }
 0x39e   : > { %v817_v55 = vmul.f32 0.5, %v3331_v19  ;;  %v3333_v59 = vpop.eup %3332 }
 0x39f   : > { %v791_v61 = vmul.f32 0.5, %v3333_v59 }
 0x3a0   : > { %v819_v56 = vadd.f32 0.5, %v817_v55 }
 0x3a1   : > { %v793_v62 = vadd.f32 0.5, %v791_v61 }
 0x3f7   : > { %v835_v57 = vpop.permute.xlu2 %834 }
 0x3f8   : > { %v837_v58 = vmul.f32 %v835_v57, %v819_v56 }
 0x3fa   : > { %845 = vst.msk [vmem:[#allocation2 + $0x8] sm:$0xff] %vm287_vm0, %v837_v58 }
 0x3fc   : > { %v841_v60 = vpop.permute.xlu0 %840 }
 0x3fd   : > { %843 = vst.msk [vmem:[#allocation3] sm:$0xff] %vm287_vm0, %v841_v60 }
 0x403   : > { %v809_v63 = vpop.permute.xlu1 %808 }
 0x404   : > { %v811_v0 = vmul.f32 %v809_v63, %v793_v62 }
 0x406   : > { %838 = vst.msk [vmem:[#allocation2] sm:$0xff] %vm287_vm0, %v811_v0 }
 0x40b   : > { %v848_v1 = vpop.permute.xlu1 %847 }
 0x40c   : > { %851 = vst.msk [vmem:[#allocation3 + $0x8] sm:$0xff] %vm287_vm0, %v848_v1 }
 0x40d PF: > { %s856_s17 = scalar_select %p282_p4, 2, 0   ;;  %v859_v2 = vld [vmem:[#allocation2] sm:$0xff]   ;;  %v861_v25 = vld [vmem:[#allocation2 + $0x8] sm:$0xff]   ;;  %v863_v3 = vld [vmem:[#allocation2 + $0x10] sm:$0xff]  }
 0x40e   : > { %p857_p7 = scmp.eq.s32.totalorder %s3453_s20, 2  ;;  %v864_v5 = vld [vmem:[#allocation3] sm:$0xff]   ;;  %v868_v7 = vld [vmem:[#allocation3 + $0x10] sm:$0xff]  }
 0x410   : > { %s3948_s13 = scalar_select %p857_p7, 4, 8 }
 0x413   : > { %v866_v6 = vld [vmem:[#allocation3 + $0x8] sm:$0xff]  }
 0x414 LB: >> { %v3123_v10 = vld [vmem:[%s4882_s1 + $0x214] sm:$0xf]  ;;  %v2779_v11 = vld [vmem:[%s4882_s1 + $0x228] sm:$0xf0]  ;;  %v3117_v4 = vld [vmem:[%s4882_s1 + $0x1e4] sm:$0xf]  ;;  %v886_v13 = vpack.c.bf16 %v3481_v25, %v3481_v25  ;;  %v4094_v62 = vpack.c.bf16 %v3477_v3, %v3477_v3  ;;  %s3489_s17 = sphi %s856_s17, %s872_s17   ;;  %v3485_v2 = vphi %v859_v2, %v4892_v2   ;;  %v3481_v25 = vphi %v861_v25, %v4891_v25   ;;  %v3477_v3 = vphi %v863_v3, %v4890_v3   ;;  %v3473_v5 = vphi %v864_v5, %v4889_v5   ;;  %v3469_v6 = vphi %v866_v6, %v4888_v6   ;;  %v3465_v7 = vphi %v868_v7, %v4887_v7  }
 0x415   : >> { %v2782_v12 = vor.u32 %v3123_v10, %v2779_v11  ;;  %v2755_v9 = vld [vmem:[%s4882_s1 + $0x1f8] sm:$0xf0]  ;;  %v2681_v17 = vld [vmem:[%s4882_s1 + $0x150] sm:$0xf]  ;;  %v3102_v18 = vld [vmem:[%s4882_s1 + $0x164] sm:$0xf0] }
 0x416   : >> { %v2758_v15 = vor.u32 %v3117_v4, %v2755_v9  ;;  %v2777_v53 = vld [vmem:[%s4882_s1 + $0x210] sm:$0xf]  ;;  %v889_v20 = vunpack.c.l.b16 %v886_v13  ;;  %v3111_v21 = vld [vmem:[%s4882_s1 + $0x1b4] sm:$0xf]  ;;  %v2731_v22 = vld [vmem:[%s4882_s1 + $0x1c8] sm:$0xf0]  ;;  %v2682_v16 = vor.u32 %v3102_v18, %v2681_v17 }
 0x417   : >> { %1390 = vmatpush.bf16.msra.mxu3 %v2782_v12  ;;  %v3126_v23 = vld [vmem:[%s4882_s1 + $0x224] sm:$0xf0]  ;;  %v3099_v24 = vld [vmem:[%s4882_s1 + $0x154] sm:$0xf]  ;;  %v2683_v26 = vld [vmem:[%s4882_s1 + $0x168] sm:$0xf0]  ;;  %v2734_v8 = vor.u32 %v3111_v21, %v2731_v22 }
 0x418   : >> { %v2778_v14 = vor.u32 %v3126_v23, %v2777_v53  ;;  %v2657_v27 = vld [vmem:[%s4882_s1 + $0x120] sm:$0xf]  ;;  %v890_v28 = vpack.c.b16 %v889_v20, %v889_v20  ;;  %v3105_v29 = vld [vmem:[%s4882_s1 + $0x184] sm:$0xf]  ;;  %1347 = vmatpush.bf16.msra.mxu0 %v2682_v16  ;;  %v2686_v30 = vor.u32 %v3099_v24, %v2683_v26  ;;  %v3096_v31 = vld [vmem:[%s4882_s1 + $0x134] sm:$0xf0] }
 0x419   : >> { %v2753_v32 = vld [vmem:[%s4882_s1 + $0x1e0] sm:$0xf]  ;;  %v3120_v33 = vld [vmem:[%s4882_s1 + $0x1f4] sm:$0xf0]  ;;  %v2707_v34 = vld [vmem:[%s4882_s1 + $0x198] sm:$0xf0]  ;;  %v2658_v36 = vor.u32 %v3096_v31, %v2657_v27 }
 0x41a   : >> { %1364 = vmatpush.bf16.msra.mxu1 %v2778_v14  ;;  %v2785_v35 = vld [vmem:[%s4882_s1 + $0x218] sm:$0xf]  ;;  %v2754_v37 = vor.u32 %v3120_v33, %v2753_v32  ;;  %v3093_v38 = vld [vmem:[%s4882_s1 + $0x124] sm:$0xf]  ;;  %s3494_s16 = smov 64   ;;  %1373 = vmatpush.bf16.msra.mxu2 %v2686_v30  ;;  %v2710_v49 = vor.u32 %v3105_v29, %v2707_v34  ;;  %vm893_vm1 = vcmask 523264  }
 0x41b   : >> { %1391 = vmatpush.bf16.msra.mxu3 %v2758_v15  ;;  %891 = vrot.lane.b32.xlu0 %v890_v28, %s3494_s16  ;;  %v2659_v39 = vld [vmem:[%s4882_s1 + $0x138] sm:$0xf0]  ;;  %v2633_v40 = vld [vmem:[%s4882_s1 + $0xf0] sm:$0xf]  ;;  %v3090_v41 = vld [vmem:[%s4882_s1 + $0x104] sm:$0xf0] }
 0x41c   : >> { %v3127_v42 = vld [vmem:[%s4882_s1 + $0x22c] sm:$0xf0]  ;;  %v2662_v43 = vor.u32 %v3093_v38, %v2659_v39  ;;  %v3114_v45 = vld [vmem:[%s4882_s1 + $0x1c4] sm:$0xf0]  ;;  %1348 = vmatpush.bf16.msra.mxu0 %v2658_v36  ;;  %v2634_v46 = vor.u32 %v3090_v41, %v2633_v40  ;;  %v3087_v47 = vld [vmem:[%s4882_s1 + $0xf4] sm:$0xf]  ;;  %1517 = vrot.lane.b32.xlu2 %v3473_v5, %s3494_s16 }
 0x41d   : >> { %v2729_v44 = vld [vmem:[%s4882_s1 + $0x1b0] sm:$0xf]  ;;  %v2635_v48 = vld [vmem:[%s4882_s1 + $0x108] sm:$0xf0]  ;;  %v2609_v51 = vld [vmem:[%s4882_s1 + $0xc0] sm:$0xf]  ;;  %v2786_v19 = vor.u32 %v3127_v42, %v2785_v35 }
 0x41e   : >> { %1365 = vmatpush.bf16.msra.mxu1 %v2754_v37  ;;  %v2730_v50 = vor.u32 %v3114_v45, %v2729_v44  ;;  %v3084_v52 = vld [vmem:[%s4882_s1 + $0xd4] sm:$0xf0]  ;;  %v2761_v54 = vld [vmem:[%s4882_s1 + $0x1e8] sm:$0xf]  ;;  %1374 = vmatpush.bf16.msra.mxu2 %v2662_v43  ;;  %v2638_v55 = vor.u32 %v3087_v47, %v2635_v48  ;;  %v2705_v56 = vld [vmem:[%s4882_s1 + $0x180] sm:$0xf] }
 0x41f   : >> { %1392 = vmatpush.bf16.msra.mxu3 %v2734_v8  ;;  %v3108_v57 = vld [vmem:[%s4882_s1 + $0x194] sm:$0xf0]  ;;  %v3121_v58 = vld [vmem:[%s4882_s1 + $0x1fc] sm:$0xf0]  ;;  %v3103_v60 = vld [vmem:[%s4882_s1 + $0x16c] sm:$0xf0]  ;;  %v2610_v61 = vor.u32 %v3084_v52, %v2609_v51 }
 0x420   : >> { %v2689_v59 = vld [vmem:[%s4882_s1 + $0x158] sm:$0xf]  ;;  %1349 = vmatpush.bf16.msra.mxu0 %v2634_v46  ;;  %v3081_v63 = vld [vmem:[%s4882_s1 + $0xc4] sm:$0xf]  ;;  %v2611_v0 = vld [vmem:[%s4882_s1 + $0xd8] sm:$0xf0]  ;;  %v2706_v1 = vor.u32 %v3108_v57, %v2705_v56  ;;  %v2762_v10 = vor.u32 %v3121_v58, %v2761_v54 }
 0x421   : >> { %v2585_v25 = vld [vmem:[%s4882_s1 + $0x90] sm:$0xf]  ;;  %v3078_v3 = vld [vmem:[%s4882_s1 + $0xa4] sm:$0xf0]  ;;  %v2737_v11 = vld [vmem:[%s4882_s1 + $0x1b8] sm:$0xf]  ;;  %v2690_v12 = vor.u32 %v3103_v60, %v2689_v59  ;;  %v2614_v9 = vor.u32 %v3081_v63, %v2611_v0 }
 0x422   : >> { %1366 = vmatpush.bf16.msra.mxu1 %v2730_v50  ;;  %1375 = vmatpush.bf16.msra.mxu2 %v2638_v55  ;;  %v3115_v4 = vld [vmem:[%s4882_s1 + $0x1cc] sm:$0xf0]  ;;  %v2665_v13 = vld [vmem:[%s4882_s1 + $0x128] sm:$0xf]  ;;  %v3097_v15 = vld [vmem:[%s4882_s1 + $0x13c] sm:$0xf0]  ;;  %v2586_v17 = vor.u32 %v3078_v3, %v2585_v25 }
 0x423   : >> { %1393 = vmatpush.bf16.msra.mxu3 %v2710_v49  ;;  %v3075_v18 = vld [vmem:[%s4882_s1 + $0x94] sm:$0xf]  ;;  %v2587_v53 = vld [vmem:[%s4882_s1 + $0xa8] sm:$0xf0]  ;;  %v2561_v20 = vld [vmem:[%s4882_s1 + $0x60] sm:$0xf]  ;;  %v2738_v22 = vor.u32 %v3115_v4, %v2737_v11  ;;  %v2666_v14 = vor.u32 %v3097_v15, %v2665_v13 }
 0x424   : >> { %1350 = vmatpush.bf16.msra.mxu0 %v2610_v61  ;;  %v3072_v21 = vld [vmem:[%s4882_s1 + $0x74] sm:$0xf0]  ;;  %v2713_v16 = vld [vmem:[%s4882_s1 + $0x188] sm:$0xf]  ;;  %v3109_v23 = vld [vmem:[%s4882_s1 + $0x19c] sm:$0xf0]  ;;  %v2590_v26 = vor.u32 %v3075_v18, %v2587_v53  ;;  %1547 = vrot.lane.b32.xlu2 %v3469_v6, %s3494_s16 }
 0x425   : >> { %v2697_v24 = vld [vmem:[%s4882_s1 + $0x160] sm:$0xf]  ;;  %v2641_v27 = vld [vmem:[%s4882_s1 + $0xf8] sm:$0xf]  ;;  %v3091_v28 = vld [vmem:[%s4882_s1 + $0x10c] sm:$0xf0]  ;;  %v2562_v30 = vor.u32 %v3072_v21, %v2561_v20  ;;  %v2714_v34 = vor.u32 %v3109_v23, %v2713_v16 }
 0x426   : >> { %2800 = vmatmul.msk.bf16.vlgmr.msra.gmra.mxu3 %vm893_vm1, %v4094_v62  ;;  %1367 = vmatpush.bf16.msra.mxu1 %v2706_v1  ;;  %v3104_v29 = vld [vmem:[%s4882_s1 + $0x174] sm:$0xf0]  ;;  %v3069_v31 = vld [vmem:[%s4882_s1 + $0x64] sm:$0xf]  ;;  %v2563_v32 = vld [vmem:[%s4882_s1 + $0x78] sm:$0xf0]  ;;  %v2642_v35 = vor.u32 %v3091_v28, %v2641_v27 }
 0x427   : >> { %1416 = vmatpush.bf16.msrb.mxu3 %v2786_v19  ;;  %1376 = vmatpush.bf16.msra.mxu2 %v2614_v9  ;;  %v2537_v33 = vld [vmem:[%s4882_s1 + $0x30] sm:$0xf]  ;;  %v3066_v8 = vld [vmem:[%s4882_s1 + $0x44] sm:$0xf0]  ;;  %v2698_v36 = vor.u32 %v3104_v29, %v2697_v24  ;;  %v2566_v38 = vor.u32 %v3069_v31, %v2563_v32  ;;  %v3085_v40 = vld [vmem:[%s4882_s1 + $0xdc] sm:$0xf0] }
 0x428   : >> { %1351 = vmatpush.bf16.msra.mxu0 %v2586_v17  ;;  %v2673_v37 = vld [vmem:[%s4882_s1 + $0x130] sm:$0xf]  ;;  %v2617_v39 = vld [vmem:[%s4882_s1 + $0xc8] sm:$0xf]  ;;  %v2538_v42 = vor.u32 %v3066_v8, %v2537_v33  ;;  %v3063_v43 = vld [vmem:[%s4882_s1 + $0x34] sm:$0xf] }
 0x429   : >> { %2799 = vmatmul.msk.bf16.vlgmr.msra.gmra.mxu1 %vm893_vm1, %v4094_v62  ;;  %v3098_v41 = vld [vmem:[%s4882_s1 + $0x144] sm:$0xf0]  ;;  %v2539_v44 = vld [vmem:[%s4882_s1 + $0x48] sm:$0xf0]  ;;  %v2513_v45 = vld [vmem:[%s4882_s1] sm:$0xf]  ;;  %v2618_v47 = vor.u32 %v3085_v40, %v2617_v39 }
 0x42a   : >> { %1399 = vmatpush.bf16.msrb.mxu1 %v2690_v12  ;;  %v3060_v46 = vld [vmem:[%s4882_s1 + $0x14] sm:$0xf0]  ;;  %v3100_v48 = vld [vmem:[%s4882_s1 + $0x15c] sm:$0xf]  ;;  %v2691_v49 = vld [vmem:[%s4882_s1 + $0x170] sm:$0xf0]  ;;  %v2674_v50 = vor.u32 %v3098_v41, %v2673_v37  ;;  %v2542_v52 = vor.u32 %v3063_v43, %v2539_v44 }
 0x42b   : >> { %1417 = vmatpush.bf16.msrb.mxu3 %v2762_v10  ;;  %1377 = vmatpush.bf16.msra.mxu2 %v2590_v26  ;;  %v2649_v51 = vld [vmem:[%s4882_s1 + $0x100] sm:$0xf]  ;;  %v2593_v19 = vld [vmem:[%s4882_s1 + $0x98] sm:$0xf]  ;;  %v3079_v54 = vld [vmem:[%s4882_s1 + $0xac] sm:$0xf0]  ;;  %v2514_v56 = vor.u32 %v3060_v46, %v2513_v45  ;;  %v2694_v59 = vor.u32 %v3100_v48, %v2691_v49 }
 0x42c   : >> { %1352 = vmatpush.bf16.msra.mxu0 %v2562_v30  ;;  %v3092_v55 = vld [vmem:[%s4882_s1 + $0x114] sm:$0xf0]  ;;  %v3057_v57 = vld [vmem:[%s4882_s1 + $0x4] sm:$0xf]  ;;  %v2515_v58 = vld [vmem:[%s4882_s1 + $0x18] sm:$0xf0]  ;;  %v2594_v63 = vor.u32 %v3079_v54, %v2593_v19 }
 0x42d   : >> { %v3124_v60 = vld [vmem:[%s4882_s1 + $0x21c] sm:$0xf]  ;;  %v2787_v61 = vld [vmem:[%s4882_s1 + $0x230] sm:$0xf0]  ;;  %v3094_v0 = vld [vmem:[%s4882_s1 + $0x12c] sm:$0xf]  ;;  %v2650_v25 = vor.u32 %v3092_v55, %v2649_v51  ;;  %v2518_v3 = vor.u32 %v3057_v57, %v2515_v58 }
 0x42e   : >> { %1400 = vmatpush.bf16.msrb.mxu1 %v2666_v14  ;;  %v2667_v1 = vld [vmem:[%s4882_s1 + $0x140] sm:$0xf0]  ;;  %v2569_v10 = vld [vmem:[%s4882_s1 + $0x68] sm:$0xf]  ;;  %v3073_v11 = vld [vmem:[%s4882_s1 + $0x7c] sm:$0xf0]  ;;  %v2790_v9 = vor.u32 %v3124_v60, %v2787_v61 }
 0x42f   : >> { %1418 = vmatpush.bf16.msrb.mxu3 %v2738_v22  ;;  %1378 = vmatpush.bf16.msra.mxu2 %v2566_v38  ;;  %v2625_v12 = vld [vmem:[%s4882_s1 + $0xd0] sm:$0xf]  ;;  %v3086_v4 = vld [vmem:[%s4882_s1 + $0xe4] sm:$0xf0]  ;;  %v2670_v13 = vor.u32 %v3094_v0, %v2667_v1  ;;  %v3118_v15 = vld [vmem:[%s4882_s1 + $0x1ec] sm:$0xf]  ;;  %v2570_v18 = vor.u32 %v3073_v11, %v2569_v10 }
 0x430   : >> { %1353 = vmatpush.bf16.msra.mxu0 %v2538_v42  ;;  %v2763_v17 = vld [vmem:[%s4882_s1 + $0x200] sm:$0xf0]  ;;  %v3088_v53 = vld [vmem:[%s4882_s1 + $0xfc] sm:$0xf]  ;;  %v2643_v20 = vld [vmem:[%s4882_s1 + $0x110] sm:$0xf0]  ;;  %v2626_v21 = vor.u32 %v3086_v4, %v2625_v12 }
 0x431   : >> { %v2545_v22 = vld [vmem:[%s4882_s1 + $0x38] sm:$0xf]  ;;  %v3067_v16 = vld [vmem:[%s4882_s1 + $0x4c] sm:$0xf0]  ;;  %v2601_v23 = vld [vmem:[%s4882_s1 + $0xa0] sm:$0xf]  ;;  %v2766_v24 = vor.u32 %v3118_v15, %v2763_v17  ;;  %v2646_v26 = vor.u32 %v3088_v53, %v2643_v20  ;;  %v885_v17 = vpack.c.bf16 %v3485_v2, %v3485_v2 }
 0x432   : >> { %1401 = vmatpush.bf16.msrb.mxu1 %v2642_v35  ;;  %v3080_v14 = vld [vmem:[%s4882_s1 + $0xb4] sm:$0xf0]  ;;  %v3112_v27 = vld [vmem:[%s4882_s1 + $0x1bc] sm:$0xf]  ;;  %v2739_v28 = vld [vmem:[%s4882_s1 + $0x1d0] sm:$0xf0]  ;;  %v2546_v29 = vor.u32 %v3067_v16, %v2545_v22 }
 0x433   : >> { %1419 = vmatpush.bf16.msrb.mxu3 %v2714_v34  ;;  %1379 = vmatpush.bf16.msra.mxu2 %v2542_v52  ;;  %v3082_v30 = vld [vmem:[%s4882_s1 + $0xcc] sm:$0xf]  ;;  %v2619_v31 = vld [vmem:[%s4882_s1 + $0xe0] sm:$0xf0]  ;;  %v2602_v32 = vor.u32 %v3080_v14, %v2601_v23  ;;  %v2521_v33 = vld [vmem:[%s4882_s1 + $0x8] sm:$0xf] }
 0x434   : >> { %1354 = vmatpush.bf16.msra.mxu0 %v2514_v56  ;;  %v3061_v8 = vld [vmem:[%s4882_s1 + $0x1c] sm:$0xf0]  ;;  %v2577_v34 = vld [vmem:[%s4882_s1 + $0x70] sm:$0xf]  ;;  %v3074_v35 = vld [vmem:[%s4882_s1 + $0x84] sm:$0xf0]  ;;  %v2622_v37 = vor.u32 %v3082_v30, %v2619_v31 }
 0x435   : >> { %v2522_v38 = vor.u32 %v3061_v8, %v2521_v33  ;;  %v2578_v39 = vor.u32 %v3074_v35, %v2577_v34  ;;  %v2553_v40 = vld [vmem:[%s4882_s1 + $0x40] sm:$0xf]  ;;  %v3068_v41 = vld [vmem:[%s4882_s1 + $0x54] sm:$0xf0]  ;;  %v2529_v43 = vld [vmem:[%s4882_s1 + $0x10] sm:$0xf] }
 0x436   : >> { %1402 = vmatpush.bf16.msrb.mxu1 %v2618_v47  ;;  %2801 = vmatmul.msk.bf16.vlgmr.msrb.gmra.mxu3 %vm893_vm1, %v4094_v62  ;;  %v2554_v42 = vor.u32 %v3068_v41, %v2553_v40  ;;  %v3062_v44 = vld [vmem:[%s4882_s1 + $0x24] sm:$0xf0]  ;;  %v3106_v46 = vld [vmem:[%s4882_s1 + $0x18c] sm:$0xf]  ;;  %v2715_v47 = vld [vmem:[%s4882_s1 + $0x1a0] sm:$0xf0] }
 0x437   : >> { %1451 = vmatpush.bf16.msra.mxu3 %v2698_v36  ;;  %1380 = vmatpush.bf16.msra.mxu2 %v2518_v3  ;;  %v2742_v36 = vor.u32 %v3112_v27, %v2739_v28  ;;  %v2530_v45 = vor.u32 %v3062_v44, %v2529_v43  ;;  %v2718_v48 = vor.u32 %v3106_v46, %v2715_v47  ;;  %v3076_v49 = vld [vmem:[%s4882_s1 + $0x9c] sm:$0xf]  ;;  %v2793_v51 = vld [vmem:[%s4882_s1 + $0x220] sm:$0xf]  ;;  %v3128_v19 = vld [vmem:[%s4882_s1 + $0x234] sm:$0xf0] }
 0x438   : >> { %1425 = vmatpush.bf16.msrb.mxu0 %v2694_v59  ;;  %v2794_v54 = vor.u32 %v3128_v19, %v2793_v51  ;;  %v3070_v55 = vld [vmem:[%s4882_s1 + $0x6c] sm:$0xf]  ;;  %v2571_v56 = vld [vmem:[%s4882_s1 + $0x80] sm:$0xf0]  ;;  %v2769_v57 = vld [vmem:[%s4882_s1 + $0x1f0] sm:$0xf] }
 0x439   : >> { %v2574_v58 = vor.u32 %v3070_v55, %v2571_v56  ;;  %v3122_v59 = vld [vmem:[%s4882_s1 + $0x204] sm:$0xf0]  ;;  %v3064_v61 = vld [vmem:[%s4882_s1 + $0x3c] sm:$0xf]  ;;  %v2745_v0 = vld [vmem:[%s4882_s1 + $0x1c0] sm:$0xf] }
 0x43a   : >> { %1403 = vmatpush.bf16.msrb.mxu1 %v2594_v63  ;;  %v2770_v60 = vor.u32 %v3122_v59, %v2769_v57  ;;  %v2547_v63 = vld [vmem:[%s4882_s1 + $0x50] sm:$0xf0]  ;;  %v3058_v10 = vld [vmem:[%s4882_s1 + $0xc] sm:$0xf]  ;;  %v2523_v11 = vld [vmem:[%s4882_s1 + $0x20] sm:$0xf0] }
 0x43b   : >> { %1452 = vmatpush.bf16.msra.mxu3 %v2674_v50  ;;  %1442 = vmatpush.bf16.msrb.mxu2 %v2790_v9  ;;  %v2595_v50 = vld [vmem:[%s4882_s1 + $0xb0] sm:$0xf0]  ;;  %v2550_v1 = vor.u32 %v3064_v61, %v2547_v63  ;;  %v2721_v12 = vld [vmem:[%s4882_s1 + $0x190] sm:$0xf]  ;;  %v2526_v4 = vor.u32 %v3058_v10, %v2523_v11  ;;  %v3110_v9 = vld [vmem:[%s4882_s1 + $0x1a4] sm:$0xf0] }
 0x43c   : >> { %1426 = vmatpush.bf16.msrb.mxu0 %v2670_v13  ;;  %v2598_v52 = vor.u32 %v3076_v49, %v2595_v50  ;;  %v2722_v13 = vor.u32 %v3110_v9, %v2721_v12  ;;  %v3101_v15 = vld [vmem:[%s4882_s1 + $0x164] sm:$0xf]  ;;  %v2795_v20 = vld [vmem:[%s4882_s1 + $0x238] sm:$0xf0]  ;;  %v3095_v16 = vld [vmem:[%s4882_s1 + $0x134] sm:$0xf] }
 0x43d   : >> { %v3125_v53 = vld [vmem:[%s4882_s1 + $0x224] sm:$0xf]  ;;  %v2675_v14 = vld [vmem:[%s4882_s1 + $0x148] sm:$0xf0]  ;;  %v2651_v30 = vld [vmem:[%s4882_s1 + $0x118] sm:$0xf0] }
 0x43e   : >> { %1404 = vmatpush.bf16.msrb.mxu1 %v2570_v18  ;;  %v2699_v18 = vld [vmem:[%s4882_s1 + $0x178] sm:$0xf0]  ;;  %v2798_v23 = vor.u32 %v3125_v53, %v2795_v20  ;;  %v2678_v27 = vor.u32 %v3095_v16, %v2675_v14  ;;  %v3089_v28 = vld [vmem:[%s4882_s1 + $0x104] sm:$0xf]  ;;  %v3083_v8 = vld [vmem:[%s4882_s1 + $0xd4] sm:$0xf] }
 0x43f   : >> { %1453 = vmatpush.bf16.msra.mxu3 %v2650_v25  ;;  %1443 = vmatpush.bf16.msrb.mxu2 %v2766_v24  ;;  %v3116_v25 = vld [vmem:[%s4882_s1 + $0x1d4] sm:$0xf0]  ;;  %v2702_v22 = vor.u32 %v3101_v15, %v2699_v18  ;;  %v3119_v24 = vld [vmem:[%s4882_s1 + $0x1f4] sm:$0xf]  ;;  %v3113_v31 = vld [vmem:[%s4882_s1 + $0x1c4] sm:$0xf]  ;;  %v2654_v33 = vor.u32 %v3089_v28, %v2651_v30 }
 0x440   : >> { %1427 = vmatpush.bf16.msrb.mxu0 %v2646_v26  ;;  %v2746_v3 = vor.u32 %v3116_v25, %v2745_v0  ;;  %v2771_v26 = vld [vmem:[%s4882_s1 + $0x208] sm:$0xf0]  ;;  %v2603_v40 = vld [vmem:[%s4882_s1 + $0xb8] sm:$0xf0]  ;;  %v3065_v44 = vld [vmem:[%s4882_s1 + $0x44] sm:$0xf] }
 0x441   : >> { %v2627_v35 = vld [vmem:[%s4882_s1 + $0xe8] sm:$0xf0]  ;;  %v3059_v47 = vld [vmem:[%s4882_s1 + $0x14] sm:$0xf]  ;;  %s3056_s11 = sshll.u32 %s3489_s17, 3  ;;  %s872_s17 = sadd.s32 1, %s3489_s17  }
 0x442   : >> { %1405 = vmatpush.bf16.msrb.mxu1 %v2546_v29  ;;  %v2774_v29 = vor.u32 %v3119_v24, %v2771_v26  ;;  %v2723_v5 = vld [vmem:[%s4882_s1 + $0x1a8] sm:$0xf0]  ;;  %v970_v56 = vld [vmem:[%s4883_s2] sm:$0x3f]  ;;  %s883_s15 = scalar_lea.vmem %s3554_s27, %s3056_s11  ;;  %p871_p8 = scmp.ge.s32.totalorder %s872_s17, %s3948_s13 }
 0x443   : >> { %1454 = vmatpush.bf16.msra.mxu3 %v2626_v21  ;;  %1444 = vmatpush.bf16.msrb.mxu2 %v2742_v36  ;;  %v3107_v36 = vld [vmem:[%s4882_s1 + $0x194] sm:$0xf]  ;;  %v2579_v43 = vld [vmem:[%s4882_s1 + $0x88] sm:$0xf0]  ;;  %v972_v57 = vperm.slane %v970_v56, 0  ;;  %v976_v15 = vperm.slane %v970_v56, 4 }
 0x444   : >> { %1428 = vmatpush.bf16.msrb.mxu0 %v2622_v37  ;;  %v2630_v37 = vor.u32 %v3083_v8, %v2627_v35  ;;  %p2805_p9 = scmp.ne.s32.totalorder (%p871_p8), %s3453_s20, 2 }
 0x446   : >> { %1406 = vmatpush.bf16.msrb.mxu1 %v2522_v38  ;;  %v2726_v38 = vor.u32 %v3107_v36, %v2723_v5 }
 0x447   : >> { %1455 = vmatpush.bf16.msra.mxu3 %v2602_v32  ;;  %1445 = vmatpush.bf16.msrb.mxu2 %v2718_v48  ;;  %v2747_v32 = vld [vmem:[%s4882_s1 + $0x1d8] sm:$0xf0]  ;;  %v2531_v48 = vld [vmem:[%s4882_s1 + $0x28] sm:$0xf0] }
 0x448   : >> { %1429 = vmatpush.bf16.msrb.mxu0 %v2598_v52  ;;  %v2750_v34 = vor.u32 %v3113_v31, %v2747_v32  ;;  %v2534_v51 = vor.u32 %v3059_v47, %v2531_v48  ;;  %v977_v31 = vperm.slane %v970_v56, 5 }
 0x44a   : >> { %1468 = vmatpush.bf16.msra.mxu1 %v2794_v54 }
 0x44b   : >> { %1456 = vmatpush.bf16.msra.mxu3 %v2578_v39  ;;  %v3077_v39 = vld [vmem:[%s4882_s1 + $0xa4] sm:$0xf] }
 0x44c   : >> { %1430 = vmatpush.bf16.msrb.mxu0 %v2574_v58  ;;  %v2606_v41 = vor.u32 %v3077_v39, %v2603_v40  ;;  %v884_v58 = vld [vmem:[%s883_s15] sm:$0xff] }
 0x44d   : >> { %v1503_v61 = vunpack.c.l.bf16 %v884_v58  ;;  %v1504_v10 = vunpack.c.h.bf16 %v884_v58 }
 0x44e   : >> { %1469 = vmatpush.bf16.msra.mxu1 %v2770_v60 }
 0x44f   : >> { %1457 = vmatpush.bf16.msra.mxu3 %v2554_v42  ;;  %v3071_v42 = vld [vmem:[%s4882_s1 + $0x74] sm:$0xf] }
 0x450   : >> { %1431 = vmatpush.bf16.msrb.mxu0 %v2550_v1  ;;  %v2582_v6 = vor.u32 %v3071_v42, %v2579_v43  ;;  %v973_v1 = vperm.slane %v970_v56, 1 }
 0x452   : >> { %1470 = vmatpush.bf16.msra.mxu1 %v2746_v3 }
 0x453   : >> { %1458 = vmatpush.bf16.msra.mxu3 %v2530_v45  ;;  %v2555_v45 = vld [vmem:[%s4882_s1 + $0x58] sm:$0xf0] }
 0x454   : >> { %1432 = vmatpush.bf16.msrb.mxu0 %v2526_v4  ;;  %v2558_v46 = vor.u32 %v3065_v44, %v2555_v45 }
 0x456   : >> { %1471 = vmatpush.bf16.msra.mxu1 %v2722_v13 }
 0x48d   : >> { %v892_v21 = vpop.permute.xlu0 %891 }
 0x48e   : >> { %v896_v2 = vsel %vm893_vm1, %v885_v17, %v892_v21  ;;  %v975_v21 = vperm.slane %v970_v56, 3 }
 0x48f   : >> { %1355 = vmatmul.bf16.vlgmr.msra.gmra.mxu0 %v896_v2  ;;  %1381 = vmatmul.bf16.vlgmr.msra.gmra.mxu2 %v896_v2 }
 0x490   : >> { %1407 = vmatmul.bf16.vlgmr.msrb.gmra.mxu1 %v896_v2  ;;  %1459 = vmatmul.bf16.vlgmr.msra.gmra.mxu3 %v896_v2 }
 0x491   : >> { %1477 = vmatpush.bf16.msra.mxu2 %v2702_v22  ;;  %1494 = vmatpush.bf16.msra.mxu0 %v2798_v23 }
 0x495   : >> { %1478 = vmatpush.bf16.msra.mxu2 %v2678_v27  ;;  %1495 = vmatpush.bf16.msra.mxu0 %v2774_v29 }
 0x499   : >> { %1479 = vmatpush.bf16.msra.mxu2 %v2654_v33  ;;  %1496 = vmatpush.bf16.msra.mxu0 %v2750_v34 }
 0x49d   : >> { %1480 = vmatpush.bf16.msra.mxu2 %v2630_v37  ;;  %1497 = vmatpush.bf16.msra.mxu0 %v2726_v38  ;;  %v974_v37 = vperm.slane %v970_v56, 2 }
 0x49f   : >> { %1433 = vmatmul.bf16.vlgmr.msrb.gmra.mxu0 %v896_v2  ;;  %2802 = vmatmul.msk.bf16.vlgmr.msrb.gmra.mxu2 %vm893_vm1, %v4094_v62 }
 0x4a0   : >> { %2803 = vmatmul.msk.bf16.vlgmr.msra.gmra.mxu1 %vm893_vm1, %v4094_v62 }
 0x4a1   : >> { %1481 = vmatpush.bf16.msra.mxu2 %v2606_v41 }
 0x4a5   : >> { %1482 = vmatpush.bf16.msra.mxu2 %v2582_v6 }
 0x4a6   : >> { %v1369_v49 = vpop.f32.mrf.mxu1 }
 0x4a9   : >> { %v1395_v50 = vpop.f32.mrf.mxu3  ;;  %1483 = vmatpush.bf16.msra.mxu2 %v2558_v46 }
 0x4ad   : >> { %1484 = vmatpush.bf16.msra.mxu2 %v2534_v51 }
 0x4ae   : >> { %v1371_v52 = vpop.f32.mrf.mxu1 }
 0x4af   : >> { %2804 = vmatmul.msk.bf16.vlgmr.msra.gmra.mxu0 %vm893_vm1, %v4094_v62 }
 0x4b0   : >> { %1485 = vmatmul.bf16.vlgmr.msra.gmra.mxu2 %v896_v2 }
 0x4b1   : >> { %v1397_v19 = vpop.f32.mrf.mxu3 }
 0x4b9   : >> { %v1421_v54 = vpop.f32.mrf.mxu3 }
 0x4c1   : >> { %v1423_v55 = vpop.f32.mrf.mxu3 }
 0x4c2   : >> { %v1518_v55 = vpop.permute.xlu2 %1517 }
 0x4ca   : >> { %v1548_v56 = vpop.permute.xlu2 %1547 }
 0x50c   : >> { %v1356_v59 = vpop.f32.mrf.mxu0 }
 0x50d   : >> { %v1357_v60 = vadd.f32 %v1356_v59, %v972_v57  ;;  %v1408_v63 = vpop.f32.mrf.mxu1 }
 0x50f   : >> { %v1370_v0 = vadd.f32 %v1369_v49, %v1357_v60 }
 0x511   : >> { %v1505_v25 = vadd.f32 %v1503_v61, %v1370_v0 }
 0x512   : >> { %v1382_v62 = vpop.f32.mrf.mxu2 }
 0x513   : >> { %v1383_v3 = vadd.f32 %v1382_v62, %v973_v1  ;;  %v1460_v11 = vpop.f32.mrf.mxu3  ;;  %v1507_v5 = vmul.f32 0.5, %v1505_v25 }
 0x514   : >> { %v1358_v12 = vpop.f32.mrf.mxu0  ;;  %v1461_v53 = vadd.f32 %v1460_v11, %v976_v15 }
 0x515   : >> { %v1396_v4 = vadd.f32 %v1395_v50, %v1383_v3  ;;  %v1410_v9 = vpop.f32.mrf.mxu1 }
 0x517   : >> { %v4444_v13 = vadd.f32 %v1504_v10, %v1396_v4 }
 0x519   : >> { %3334 = vtanh.f32 %v4444_v13 }
 0x51a   : >> { %v1384_v17 = vpop.f32.mrf.mxu2 }
 0x51b   : >> { %v1462_v18 = vpop.f32.mrf.mxu3 }
 0x51c   : >> { %v1434_v20 = vpop.f32.mrf.mxu0 }
 0x51d   : >> { %v1473_v22 = vpop.f32.mrf.mxu1  ;;  %v1435_v2 = vadd.f32 %v1434_v20, %v975_v21  ;;  %v1508_v20 = vmul.f32 0.5, %v4444_v13 }
 0x51e   : >> { %v1474_v16 = vadd.f32 %v1473_v22, %v1461_v53 }
 0x51f   : >> { %v3335_v23 = vpop.eup %3334 }
 0x520   : >> { %1522 = vrot.lane.b32.xlu0 %v3335_v23, %s3494_s16  ;;  %v1567_v48 = vmul.f32 0.5, %v1474_v16 }
 0x522   : >> { %v1447_v14 = vpop.f32.mrf.mxu2 }
 0x523   : >> { %v4448_v24 = vadd.f32 %v1447_v14, %v1435_v2 }
 0x524   : >> { %v1436_v26 = vpop.f32.mrf.mxu0 }
 0x525   : >> { %3336 = vtanh.f32 %v4448_v24  ;;  %v1475_v27 = vpop.f32.mrf.mxu1  ;;  %v1538_v12 = vmul.f32 0.5, %v4448_v24 }
 0x528   : >> { %1577 = vrot.lane.b32.xlu0 %v3465_v7, %s3494_s16  ;;  %v1409_v7 = vadd.f32 %v1408_v63, %v974_v37 }
 0x52a   : >> { %v1449_v28 = vpop.f32.mrf.mxu2  ;;  %v1422_v38 = vadd.f32 %v1421_v54, %v1409_v7 }
 0x52b   : >> { %v3337_v29 = vpop.eup %3336 }
 0x52c   : >> { %v1499_v30 = vpop.f32.mrf.mxu0  ;;  %1552 = vrot.lane.b32.xlu1 %v3337_v29, %s3494_s16  ;;  %v1537_v40 = vmul.f32 0.5, %v1422_v38 }
 0x533   : >> { %v1486_v32 = vpop.f32.mrf.mxu2 }
 0x534   : >> { %v1487_v33 = vadd.f32 %v1486_v32, %v977_v31  ;;  %v1501_v8 = vpop.f32.mrf.mxu0 }
 0x536   : >> { %v4454_v34 = vadd.f32 %v1499_v30, %v1487_v33 }
 0x538   : >> { %3338 = vtanh.f32 %v4454_v34  ;;  %v1568_v2 = vmul.f32 0.5, %v4454_v34 }
 0x539   : >> { %3340 = vtanh.f32 %v1507_v5 }
 0x53a   : >> { %3342 = vtanh.f32 %v1537_v40 }
 0x53b   : >> { %v1488_v35 = vpop.f32.mrf.mxu2  ;;  %3344 = vtanh.f32 %v1567_v48 }
 0x53e   : >> { %v3339_v36 = vpop.eup %3338 }
 0x53f   : >> { %1582 = vrot.lane.b32.xlu1 %v3339_v36, %s3494_s16  ;;  %v3341_v39 = vpop.eup %3340 }
 0x540   : >> { %v1511_v41 = vmul.f32 0.5, %v3341_v39  ;;  %v3343_v44 = vpop.eup %3342 }
 0x541   : >> { %v1541_v45 = vmul.f32 0.5, %v3343_v44  ;;  %v3345_v50 = vpop.eup %3344 }
 0x542   : >> { %v1513_v42 = vadd.f32 0.5, %v1511_v41  ;;  %v1571_v51 = vmul.f32 0.5, %v3345_v50 }
 0x543   : >> { %v1543_v46 = vadd.f32 0.5, %v1541_v45 }
 0x544   : >> { %v1573_v52 = vadd.f32 0.5, %v1571_v51  ;;  %v1520_v61 = vmul.f32 %v1518_v55, %v1513_v42 }
 0x545   : >> { %v1550_v57 = vmul.f32 %v1548_v56, %v1543_v46 }
 0x592   : >> { %v1523_v43 = vpop.permute.xlu0 %1522 }
 0x593   : >> { %v1525_v6 = vmul.f32 %v1523_v43, %v1513_v42 }
 0x595   : >> { %1527 = vrot.lane.b32.xlu1 %v1525_v6, %s3494_s16 }
 0x59a   : >> { %v1578_v25 = vpop.permute.xlu0 %1577 }
 0x59b   : >> { %v1580_v62 = vmul.f32 %v1578_v25, %v1573_v52 }
 0x59e   : >> { %v1553_v47 = vpop.permute.xlu1 %1552 }
 0x59f   : >> { %v1555_v49 = vmul.f32 %v1553_v47, %v1543_v46 }
 0x5a1   : >> { %1557 = vrot.lane.b32.xlu2 %v1555_v49, %s3494_s16 }
 0x5b1   : >> { %v1583_v19 = vpop.permute.xlu1 %1582 }
 0x5b2   : >> { %v1585_v54 = vmul.f32 %v1583_v19, %v1573_v52 }
 0x5b4   : >> { %1587 = vrot.lane.b32.xlu0 %v1585_v54, %s3494_s16 }
 0x5fb   : >> { %v1558_v58 = vpop.permute.xlu2 %1557 }
 0x5fc   : >> { %v1560_v59 = vadd.f32 %v1558_v58, %v1550_v57 }
 0x5fe   : >> { %3346 = vtanh.f32 %v1560_v59 }
 0x604   : >> { %v3347_v60 = vpop.eup %3346 }
 0x605   : >> { %1563 = vrot.lane.b32.xlu2 %v3347_v60, %s3494_s16 }
 0x607   : >> { %v1528_v63 = vpop.permute.xlu1 %1527 }
 0x608   : >> { %v1530_v0 = vadd.f32 %v1528_v63, %v1520_v61 }
 0x60a   : >> { %3348 = vtanh.f32 %v1530_v0 }
 0x60d   : >> { %1602 = vrot.lane.b32.xlu2 %v1560_v59, %s3494_s16 }
 0x610   : >> { %v3349_v1 = vpop.eup %3348 }
 0x611   : >> { %1533 = vrot.lane.b32.xlu1 %v3349_v1, %s3494_s16 }
 0x619   : >> { %1598 = vrot.lane.b32.xlu1 %v1530_v0, %s3494_s16 }
 0x626   : >> { %v1588_v3 = vpop.permute.xlu0 %1587 }
 0x627   : >> { %v1590_v10 = vadd.f32 %v1588_v3, %v1580_v62 }
 0x629   : >> { %3350 = vtanh.f32 %v1590_v10 }
 0x62a   : >> { %3352 = vtanh.f32 %v1538_v12 }
 0x62b   : >> { %3354 = vtanh.f32 %v1508_v20 }
 0x62c   : >> { %3356 = vtanh.f32 %v1568_v2 }
 0x62f   : >> { %v3351_v11 = vpop.eup %3350 }
 0x630   : >> { %1593 = vrot.lane.b32.xlu0 %v3351_v11, %s3494_s16  ;;  %v3353_v4 = vpop.eup %3352 }
 0x631   : >> { %v1542_v9 = vmul.f32 0.5, %v3353_v4  ;;  %v3355_v21 = vpop.eup %3354 }
 0x632   : >> { %v1512_v22 = vmul.f32 0.5, %v3355_v21  ;;  %v3357_v24 = vpop.eup %3356 }
 0x633   : >> { %v1544_v15 = vadd.f32 0.5, %v1542_v9  ;;  %v1572_v27 = vmul.f32 0.5, %v3357_v24 }
 0x634   : >> { %v1514_v16 = vadd.f32 0.5, %v1512_v22 }
 0x635   : >> { %v1574_v28 = vadd.f32 0.5, %v1572_v27 }
 0x638   : >> { %1606 = vrot.lane.b32.xlu0 %v1590_v10, %s3494_s16 }
 0x65f   : >> { %v1564_v17 = vpop.permute.xlu2 %1563 }
 0x660   : >> { %v1566_v18 = vmul.f32 %v1564_v17, %v1544_v15  }
 0x662   : >> { %v4891_v25 = vmov %v1566_v18  ;;  %1612 = vst.msk [vmem:[#allocation2 + $0x8] sm:$0xff] (%p871_p8), %vm893_vm1, %v1566_v18 }
 0x667   : >> { %v1603_v53 = vpop.permute.xlu2 %1602  }
 0x668   : >> { %v4888_v6 = vmov %v1603_v53  ;;  %1613 = vst.msk [vmem:[#allocation3 + $0x8] sm:$0xff] (%p871_p8), %vm893_vm1, %v1603_v53 }
 0x683   : >> { %v1534_v23 = vpop.permute.xlu1 %1533 }
 0x684   : >> { %v1536_v14 = vmul.f32 %v1534_v23, %v1514_v16  }
 0x686   : >> { %v4892_v2 = vmov %v1536_v14  ;;  %1610 = vst.msk [vmem:[#allocation2] sm:$0xff] (%p871_p8), %vm893_vm1, %v1536_v14 }
 0x68b   : >> { %v1599_v26 = vpop.permute.xlu1 %1598  }
 0x68c   : >> { %v4889_v5 = vmov %v1599_v26  ;;  %1611 = vst.msk [vmem:[#allocation3] sm:$0xff] (%p871_p8), %vm893_vm1, %v1599_v26 }
 0x6a2   : >> { %v1594_v29 = vpop.permute.xlu0 %1593 }
 0x6a3   : >> { %v1596_v30 = vmul.f32 %v1594_v29, %v1574_v28  }
 0x6a5   : >> { %v4890_v3 = vmov %v1596_v30  ;;  %1614 = vst.msk [vmem:[#allocation2 + $0x10] sm:$0xff] (%p871_p8), %vm893_vm1, %v1596_v30 }
 0x6a7   : > { %874 = sbr.rel (!%p871_p8) target bundleno = 1044 (0x414), region = 95 }
 0x6aa   : >> { %v1607_v31 = vpop.permute.xlu0 %1606  }
 0x6ab   : >> { %v4887_v7 = vmov %v1607_v31  ;;  %1615 = vst.msk [vmem:[#allocation3 + $0x10] sm:$0xff] (%p871_p8), %vm893_vm1, %v1607_v31 }
 0x6ac   : > { %1618 = sbr.rel (%p2805_p9) target bundleno = 3023 (0xbcf), region = 55  ;;  %s3495_s25 = smov (!%p2805_p9), 64  }
 0x6b1   : > { %v1620_v13 = vld [vmem:[#allocation2 + $0x8] sm:$0xff]  ;;  %v2920_v32 = vld [vmem:[%s4882_s1 + $0x158] sm:$0xf]  ;;  %v3159_v33 = vld [vmem:[%s4882_s1 + $0x16c] sm:$0xf0]  ;;  %vm2209_vm2 = vcmask 7168  }
 0x6b2   : > { %v1625_v8 = vpack.c.bf16 %v1620_v13, %v1620_v13  ;;  %v2921_v34 = vor.u32 %v3159_v33, %v2920_v32  ;;  %v2984_v35 = vld [vmem:[%s4882_s1 + $0x218] sm:$0xf]  ;;  %v3175_v36 = vld [vmem:[%s4882_s1 + $0x22c] sm:$0xf0]  ;;  %v2904_v5 = vld [vmem:[%s4882_s1 + $0x128] sm:$0xf] }
 0x6b3   : > { %v2985_v37 = vor.u32 %v3175_v36, %v2984_v35  ;;  %v3155_v7 = vld [vmem:[%s4882_s1 + $0x13c] sm:$0xf0]  ;;  %v2968_v38 = vld [vmem:[%s4882_s1 + $0x1e8] sm:$0xf]  ;;  %v2888_v42 = vld [vmem:[%s4882_s1 + $0xf8] sm:$0xf] }
 0x6b4   : > { %v3171_v39 = vld [vmem:[%s4882_s1 + $0x1fc] sm:$0xf0]  ;;  %v1628_v40 = vunpack.c.l.b16 %v1625_v8  ;;  %1937 = vmatpush.bf16.msra.mxu0 %v2921_v34  ;;  %v2905_v41 = vor.u32 %v3155_v7, %v2904_v5  ;;  %v3151_v6 = vld [vmem:[%s4882_s1 + $0x10c] sm:$0xf0]  ;;  %v3173_v44 = vld [vmem:[%s4882_s1 + $0x21c] sm:$0xf] }
 0x6b5   : > { %1954 = vmatpush.bf16.msra.mxu1 %v2985_v37  ;;  %v2969_v43 = vor.u32 %v3171_v39, %v2968_v38  ;;  %v2986_v45 = vld [vmem:[%s4882_s1 + $0x230] sm:$0xf0]  ;;  %v2952_v47 = vld [vmem:[%s4882_s1 + $0x1b8] sm:$0xf]  ;;  %v3167_v48 = vld [vmem:[%s4882_s1 + $0x1cc] sm:$0xf0]  ;;  %v2889_v52 = vor.u32 %v3151_v6, %v2888_v42 }
 0x6b6   : > { %v1629_v46 = vpack.c.b16 %v1628_v40, %v1628_v40  ;;  %v2989_v49 = vor.u32 %v3173_v44, %v2986_v45  ;;  %v3157_v50 = vld [vmem:[%s4882_s1 + $0x15c] sm:$0xf]  ;;  %v2922_v51 = vld [vmem:[%s4882_s1 + $0x170] sm:$0xf0]  ;;  %v2872_v19 = vld [vmem:[%s4882_s1 + $0xc8] sm:$0xf]  ;;  %v2953_v57 = vor.u32 %v3167_v48, %v2952_v47 }
 0x6b7   : > { %v2925_v54 = vor.u32 %v3157_v50, %v2922_v51  ;;  %v3169_v55 = vld [vmem:[%s4882_s1 + $0x1ec] sm:$0xf]  ;;  %v2970_v56 = vld [vmem:[%s4882_s1 + $0x200] sm:$0xf0]  ;;  %v3147_v58 = vld [vmem:[%s4882_s1 + $0xdc] sm:$0xf0] }
 0x6b8   : > { %1630 = vrot.lane.b32.xlu0 %v1629_v46, %s3495_s25  ;;  %1938 = vmatpush.bf16.msra.mxu0 %v2905_v41  ;;  %v2936_v59 = vld [vmem:[%s4882_s1 + $0x188] sm:$0xf]  ;;  %v3163_v60 = vld [vmem:[%s4882_s1 + $0x19c] sm:$0xf0]  ;;  %v2973_v61 = vor.u32 %v3169_v55, %v2970_v56  ;;  %v3153_v63 = vld [vmem:[%s4882_s1 + $0x12c] sm:$0xf]  ;;  %v2873_v11 = vor.u32 %v3147_v58, %v2872_v19 }
 0x6b9   : > { %1955 = vmatpush.bf16.msra.mxu1 %v2969_v43  ;;  %1980 = vmatpush.bf16.msra.mxu3 %v2989_v49  ;;  %v2906_v0 = vld [vmem:[%s4882_s1 + $0x140] sm:$0xf0]  ;;  %v3165_v1 = vld [vmem:[%s4882_s1 + $0x1bc] sm:$0xf]  ;;  %v2928_v25 = vld [vmem:[%s4882_s1 + $0x160] sm:$0xf]  ;;  %v2937_v4 = vor.u32 %v3163_v60, %v2936_v59 }
 0x6ba   : > { %1963 = vmatpush.bf16.msra.mxu2 %v2925_v54  ;;  %v3160_v62 = vld [vmem:[%s4882_s1 + $0x174] sm:$0xf0]  ;;  %v2909_v3 = vor.u32 %v3153_v63, %v2906_v0  ;;  %v2954_v10 = vld [vmem:[%s4882_s1 + $0x1d0] sm:$0xf0]  ;;  %v3149_v12 = vld [vmem:[%s4882_s1 + $0xfc] sm:$0xf] }
 0x6bb   : > { %v2856_v9 = vld [vmem:[%s4882_s1 + $0x98] sm:$0xf]  ;;  %v3143_v15 = vld [vmem:[%s4882_s1 + $0xac] sm:$0xf0]  ;;  %v2957_v17 = vor.u32 %v3165_v1, %v2954_v10  ;;  %v2890_v18 = vld [vmem:[%s4882_s1 + $0x110] sm:$0xf0]  ;;  %v4590_v53 = vor.u32 %v3160_v62, %v2928_v25 }
 0x6bc   : > { %1939 = vmatpush.bf16.msra.mxu0 %v2889_v52  ;;  %v2912_v20 = vld [vmem:[%s4882_s1 + $0x130] sm:$0xf]  ;;  %v2893_v21 = vor.u32 %v3149_v12, %v2890_v18  ;;  %v3161_v22 = vld [vmem:[%s4882_s1 + $0x18c] sm:$0xf]  ;;  %v2938_v16 = vld [vmem:[%s4882_s1 + $0x1a0] sm:$0xf0]  ;;  %v2857_v2 = vor.u32 %v3143_v15, %v2856_v9 }
 0x6bd   : > { %1956 = vmatpush.bf16.msra.mxu1 %v2953_v57  ;;  %1981 = vmatpush.bf16.msra.mxu3 %v2973_v61  ;;  %v3156_v23 = vld [vmem:[%s4882_s1 + $0x144] sm:$0xf0]  ;;  %v1621_v14 = vld [vmem:[#allocation2 + $0x10] sm:$0xff]  ;;  %v3145_v26 = vld [vmem:[%s4882_s1 + $0xcc] sm:$0xf]  ;;  %v2941_v29 = vor.u32 %v3161_v22, %v2938_v16 }
 0x6be   : > { %1964 = vmatpush.bf16.msra.mxu2 %v2909_v3  ;;  %v2840_v24 = vld [vmem:[%s4882_s1 + $0x68] sm:$0xf]  ;;  %v2874_v27 = vld [vmem:[%s4882_s1 + $0xe0] sm:$0xf0]  ;;  %v3139_v28 = vld [vmem:[%s4882_s1 + $0x7c] sm:$0xf0]  ;;  %v4623_v13 = vor.u32 %v3156_v23, %v2912_v20  ;;  %v4628_v33 = vpack.c.bf16 %v1621_v14, %v1621_v14 }
 0x6bf   : > { %v2992_v30 = vld [vmem:[%s4882_s1 + $0x220] sm:$0xf]  ;;  %v3176_v31 = vld [vmem:[%s4882_s1 + $0x234] sm:$0xf0]  ;;  %v2877_v8 = vor.u32 %v3145_v26, %v2874_v27  ;;  %v3141_v36 = vld [vmem:[%s4882_s1 + $0x9c] sm:$0xf]  ;;  %v2841_v37 = vor.u32 %v3139_v28, %v2840_v24 }
 0x6c0   : > { %1940 = vmatpush.bf16.msra.mxu0 %v2873_v11  ;;  %v2896_v32 = vld [vmem:[%s4882_s1 + $0x100] sm:$0xf]  ;;  %v3152_v34 = vld [vmem:[%s4882_s1 + $0x114] sm:$0xf0]  ;;  %v4633_v35 = vor.u32 %v3176_v31, %v2992_v30  ;;  %v2858_v5 = vld [vmem:[%s4882_s1 + $0xb0] sm:$0xf0] }
 0x6c1   : > { %1957 = vmatpush.bf16.msra.mxu1 %v2937_v4  ;;  %1982 = vmatpush.bf16.msra.mxu3 %v2957_v17  ;;  %v2976_v7 = vld [vmem:[%s4882_s1 + $0x1f0] sm:$0xf]  ;;  %v3172_v38 = vld [vmem:[%s4882_s1 + $0x204] sm:$0xf0]  ;;  %v2824_v39 = vld [vmem:[%s4882_s1 + $0x38] sm:$0xf]  ;;  %v4656_v41 = vor.u32 %v3152_v34, %v2896_v32  ;;  %v2861_v43 = vor.u32 %v3141_v36, %v2858_v5 }
 0x6c2   : > { %1965 = vmatpush.bf16.msra.mxu2 %v2893_v21  ;;  %v3135_v40 = vld [vmem:[%s4882_s1 + $0x4c] sm:$0xf0]  ;;  %v3148_v6 = vld [vmem:[%s4882_s1 + $0xe4] sm:$0xf0]  ;;  %v4665_v44 = vor.u32 %v3172_v38, %v2976_v7  ;;  %v3137_v45 = vld [vmem:[%s4882_s1 + $0x6c] sm:$0xf] }
 0x6c3   : > { %v2880_v42 = vld [vmem:[%s4882_s1 + $0xd0] sm:$0xf]  ;;  %v2842_v46 = vld [vmem:[%s4882_s1 + $0x80] sm:$0xf0]  ;;  %v2825_v47 = vor.u32 %v3135_v40, %v2824_v39  ;;  %v2960_v48 = vld [vmem:[%s4882_s1 + $0x1c0] sm:$0xf] }
 0x6c4   : > { %1941 = vmatpush.bf16.msra.mxu0 %v2857_v2  ;;  %2998 = vmatmul.msk.bf16.vlgmr.msra.gmra.mxu1 %vm893_vm1, %v4628_v33  ;;  %v3168_v49 = vld [vmem:[%s4882_s1 + $0x1d4] sm:$0xf0]  ;;  %v2808_v50 = vld [vmem:[%s4882_s1 + $0x8] sm:$0xf]  ;;  %v3131_v51 = vld [vmem:[%s4882_s1 + $0x1c] sm:$0xf0]  ;;  %v2881_v19 = vor.u32 %v3148_v6, %v2880_v42  ;;  %v2845_v57 = vor.u32 %v3137_v45, %v2842_v46 }
 0x6c5   : > { %1989 = vmatpush.bf16.msrb.mxu1 %v4590_v53  ;;  %1983 = vmatpush.bf16.msra.mxu3 %v2941_v29  ;;  %v2864_v52 = vld [vmem:[%s4882_s1 + $0xa0] sm:$0xf]  ;;  %v3144_v54 = vld [vmem:[%s4882_s1 + $0xb4] sm:$0xf0]  ;;  %v3158_v55 = vld [vmem:[%s4882_s1 + $0x164] sm:$0xf]  ;;  %v2961_v58 = vor.u32 %v3168_v49, %v2960_v48  ;;  %v2809_v63 = vor.u32 %v3131_v51, %v2808_v50 }
 0x6c6   : > { %1966 = vmatpush.bf16.msra.mxu2 %v2877_v8  ;;  %v2930_v56 = vld [vmem:[%s4882_s1 + $0x178] sm:$0xf0]  ;;  %v2826_v60 = vld [vmem:[%s4882_s1 + $0x50] sm:$0xf0]  ;;  %v2944_v61 = vld [vmem:[%s4882_s1 + $0x190] sm:$0xf]  ;;  %v2865_v25 = vor.u32 %v3144_v54, %v2864_v52 }
 0x6c7   : > { %v3133_v59 = vld [vmem:[%s4882_s1 + $0x3c] sm:$0xf]  ;;  %v3164_v0 = vld [vmem:[%s4882_s1 + $0x1a4] sm:$0xf0]  ;;  %v4713_v1 = vor.u32 %v3158_v55, %v2930_v56  ;;  %v2848_v62 = vld [vmem:[%s4882_s1 + $0x70] sm:$0xf] }
 0x6c8   : > { %1942 = vmatpush.bf16.msra.mxu0 %v2841_v37  ;;  %2999 = vmatmul.msk.bf16.vlgmr.msra.gmra.mxu3 %vm893_vm1, %v4628_v33  ;;  %v3154_v3 = vld [vmem:[%s4882_s1 + $0x134] sm:$0xf]  ;;  %v2914_v10 = vld [vmem:[%s4882_s1 + $0x148] sm:$0xf0]  ;;  %v2829_v11 = vor.u32 %v3133_v59, %v2826_v60  ;;  %v3140_v12 = vld [vmem:[%s4882_s1 + $0x84] sm:$0xf0]  ;;  %v2945_v4 = vor.u32 %v3164_v0, %v2944_v61 }
 0x6c9   : > { %1990 = vmatpush.bf16.msrb.mxu1 %v4623_v13  ;;  %2006 = vmatpush.bf16.msrb.mxu3 %v4633_v35  ;;  %v3129_v9 = vld [vmem:[%s4882_s1 + $0xc] sm:$0xf]  ;;  %v2810_v15 = vld [vmem:[%s4882_s1 + $0x20] sm:$0xf0]  ;;  %v4734_v17 = vor.u32 %v3154_v3, %v2914_v10  ;;  %v2849_v18 = vor.u32 %v3140_v12, %v2848_v62  ;;  %v2898_v21 = vld [vmem:[%s4882_s1 + $0x118] sm:$0xf0] }
 0x6ca   : > { %1967 = vmatpush.bf16.msra.mxu2 %v2861_v43  ;;  %v3150_v20 = vld [vmem:[%s4882_s1 + $0x104] sm:$0xf]  ;;  %v2813_v22 = vor.u32 %v3129_v9, %v2810_v15  ;;  %v2832_v16 = vld [vmem:[%s4882_s1 + $0x40] sm:$0xf]  ;;  %v3136_v23 = vld [vmem:[%s4882_s1 + $0x54] sm:$0xf0] }
 0x6cb   : > { %v4750_v14 = vor.u32 %v3150_v20, %v2898_v21  ;;  %v2833_v26 = vor.u32 %v3136_v23, %v2832_v16  ;;  %v3146_v2 = vld [vmem:[%s4882_s1 + $0xd4] sm:$0xf]  ;;  %v2882_v24 = vld [vmem:[%s4882_s1 + $0xe8] sm:$0xf0]  ;;  %v2816_v27 = vld [vmem:[%s4882_s1 + $0x10] sm:$0xf] }
 0x6cc   : > { %1943 = vmatpush.bf16.msra.mxu0 %v2825_v47  ;;  %v4767_v28 = vor.u32 %v3146_v2, %v2882_v24  ;;  %v3142_v30 = vld [vmem:[%s4882_s1 + $0xa4] sm:$0xf]  ;;  %v2866_v31 = vld [vmem:[%s4882_s1 + $0xb8] sm:$0xf0]  ;;  %v2850_v36 = vld [vmem:[%s4882_s1 + $0x88] sm:$0xf0] }
 0x6cd   : > { %1991 = vmatpush.bf16.msrb.mxu1 %v4656_v41  ;;  %2007 = vmatpush.bf16.msrb.mxu3 %v4665_v44  ;;  %v2869_v32 = vor.u32 %v3142_v30, %v2866_v31  ;;  %v2994_v8 = vld [vmem:[%s4882_s1 + $0x238] sm:$0xf0]  ;;  %v3170_v5 = vld [vmem:[%s4882_s1 + $0x1f4] sm:$0xf]  ;;  %v2978_v7 = vld [vmem:[%s4882_s1 + $0x208] sm:$0xf0] }
 0x6ce   : > { %1968 = vmatpush.bf16.msra.mxu2 %v2845_v57  ;;  %v2981_v38 = vor.u32 %v3170_v5, %v2978_v7  ;;  %v3134_v39 = vld [vmem:[%s4882_s1 + $0x44] sm:$0xf]  ;;  %v2834_v40 = vld [vmem:[%s4882_s1 + $0x58] sm:$0xf0]  ;;  %v2818_v45 = vld [vmem:[%s4882_s1 + $0x28] sm:$0xf0] }
 0x6cf   : > { %v2962_v42 = vld [vmem:[%s4882_s1 + $0x1d8] sm:$0xf0]  ;;  %v2837_v43 = vor.u32 %v3134_v39, %v2834_v40  ;;  %v3162_v46 = vld [vmem:[%s4882_s1 + $0x194] sm:$0xf]  ;;  %v2946_v47 = vld [vmem:[%s4882_s1 + $0x1a8] sm:$0xf0] }
 0x6d0   : > { %1944 = vmatpush.bf16.msra.mxu0 %v2809_v63  ;;  %v2949_v49 = vor.u32 %v3162_v46, %v2946_v47  ;;  %v1622_v50 = vld [vmem:[#allocation3 + $0x8] sm:$0xff]  ;;  %v1623_v16 = vld [vmem:[#allocation3 + $0x10] sm:$0xff] }
 0x6d1   : > { %1992 = vmatpush.bf16.msrb.mxu1 %v2881_v19  ;;  %2008 = vmatpush.bf16.msrb.mxu3 %v2961_v58  ;;  %v1619_v51 = vld [vmem:[#allocation2] sm:$0xff] }
 0x6d2   : > { %1969 = vmatpush.bf16.msra.mxu2 %v2829_v11  ;;  %2051 = vrot.lane.b32.xlu1 %v1622_v50, %s3495_s25  ;;  %v4823_v52 = vpack.c.bf16 %v1619_v51, %v1619_v51  ;;  %v4836_v61 = vld [vmem:[%s4883_s2] sm:$0x3f] }
 0x6d3   : > { %v1688_v63 = vperm.slane %v4836_v61, 4  ;;  %v1686_v2 = vperm.slane %v4836_v61, 2 }
 0x6d4   : > { %2015 = vmatpush.bf16.msrb.mxu0 %v4713_v1 }
 0x6d5   : > { %1993 = vmatpush.bf16.msrb.mxu1 %v2865_v25  ;;  %2009 = vmatpush.bf16.msrb.mxu3 %v2945_v4 }
 0x6d6   : > { %1970 = vmatpush.bf16.msra.mxu2 %v2813_v22 }
 0x6d8   : > { %2016 = vmatpush.bf16.msrb.mxu0 %v4734_v17  ;;  %3000 = vmatmul.msk.bf16.vlgmr.msrb.gmra.mxu3 %vm893_vm1, %v4628_v33 }
 0x6d9   : > { %2114 = vmatpush.bf16.msra.mxu3 %v4590_v53  ;;  %1994 = vmatpush.bf16.msrb.mxu1 %v2849_v18  ;;  %v3132_v53 = vld [vmem:[%s4882_s1 + $0x24] sm:$0xf0] }
 0x6da   : > { %v2817_v29 = vor.u32 %v3132_v53, %v2816_v27 }
 0x6dc   : > { %2017 = vmatpush.bf16.msrb.mxu0 %v4750_v14 }
 0x6dd   : > { %2115 = vmatpush.bf16.msra.mxu3 %v4623_v13  ;;  %1995 = vmatpush.bf16.msrb.mxu1 %v2833_v26  ;;  %v3174_v13 = vld [vmem:[%s4882_s1 + $0x224] sm:$0xf] }
 0x6de   : > { %v2997_v34 = vor.u32 %v3174_v13, %v2994_v8 }
 0x6e0   : > { %2018 = vmatpush.bf16.msrb.mxu0 %v4767_v28  ;;  %2032 = vmatpush.bf16.msrb.mxu2 %v2997_v34 }
 0x6e1   : > { %2116 = vmatpush.bf16.msra.mxu3 %v4656_v41  ;;  %1996 = vmatpush.bf16.msrb.mxu1 %v2817_v29  ;;  %v3166_v41 = vld [vmem:[%s4882_s1 + $0x1c4] sm:$0xf] }
 0x6e2   : > { %v2965_v6 = vor.u32 %v3166_v41, %v2962_v42 }
 0x6e4   : > { %2019 = vmatpush.bf16.msrb.mxu0 %v2869_v32  ;;  %2033 = vmatpush.bf16.msrb.mxu2 %v2981_v38 }
 0x6e5   : > { %2131 = vmatpush.bf16.msra.mxu1 %v4633_v35  ;;  %2117 = vmatpush.bf16.msra.mxu3 %v2881_v19  ;;  %v3138_v35 = vld [vmem:[%s4882_s1 + $0x74] sm:$0xf] }
 0x6e6   : > { %v2853_v37 = vor.u32 %v3138_v35, %v2850_v36 }
 0x6e8   : > { %2020 = vmatpush.bf16.msrb.mxu0 %v2853_v37  ;;  %2034 = vmatpush.bf16.msrb.mxu2 %v2965_v6 }
 0x6e9   : > { %2132 = vmatpush.bf16.msra.mxu1 %v4665_v44  ;;  %2118 = vmatpush.bf16.msra.mxu3 %v2865_v25  ;;  %v3130_v44 = vld [vmem:[%s4882_s1 + $0x14] sm:$0xf]  ;;  %v1687_v25 = vperm.slane %v4836_v61, 3 }
 0x6ea   : > { %v2821_v48 = vor.u32 %v3130_v44, %v2818_v45 }
 0x6ec   : > { %2021 = vmatpush.bf16.msrb.mxu0 %v2837_v43  ;;  %2035 = vmatpush.bf16.msrb.mxu2 %v2949_v49 }
 0x6ed   : > { %2133 = vmatpush.bf16.msra.mxu1 %v2961_v58  ;;  %2119 = vmatpush.bf16.msra.mxu3 %v2849_v18  ;;  %v1689_v18 = vperm.slane %v4836_v61, 5 }
 0x6f0   : > { %2022 = vmatpush.bf16.msrb.mxu0 %v2821_v48 }
 0x6f1   : > { %2134 = vmatpush.bf16.msra.mxu1 %v2945_v4  ;;  %2120 = vmatpush.bf16.msra.mxu3 %v2833_v26 }
 0x6f5   : > { %2121 = vmatpush.bf16.msra.mxu3 %v2817_v29 }
 0x72a   : > { %v1631_v19 = vpop.permute.xlu0 %1630 }
 0x72b   : > { %v1634_v54 = vsel %vm893_vm1, %v4823_v52, %v1631_v19 }
 0x72c   : > { %1945 = vmatmul.bf16.vlgmr.msra.gmra.mxu0 %v1634_v54  ;;  %1971 = vmatmul.bf16.vlgmr.msra.gmra.mxu2 %v1634_v54 }
 0x72d   : > { %1997 = vmatmul.bf16.vlgmr.msrb.gmra.mxu1 %v1634_v54  ;;  %2157 = vmatpush.bf16.msra.mxu0 %v2997_v34 }
 0x72e   : > { %2140 = vmatpush.bf16.msra.mxu2 %v4713_v1 }
 0x731   : > { %2158 = vmatpush.bf16.msra.mxu0 %v2981_v38 }
 0x732   : > { %2141 = vmatpush.bf16.msra.mxu2 %v4734_v17 }
 0x735   : > { %2159 = vmatpush.bf16.msra.mxu0 %v2965_v6 }
 0x736   : > { %2142 = vmatpush.bf16.msra.mxu2 %v4750_v14 }
 0x739   : > { %2160 = vmatpush.bf16.msra.mxu0 %v2949_v49 }
 0x73a   : > { %2143 = vmatpush.bf16.msra.mxu2 %v4767_v28 }
 0x73c   : > { %2023 = vmatmul.bf16.vlgmr.msrb.gmra.mxu0 %v1634_v54  ;;  %3001 = vmatmul.msk.bf16.vlgmr.msrb.gmra.mxu2 %vm893_vm1, %v4628_v33 }
 0x73e   : > { %2144 = vmatpush.bf16.msra.mxu2 %v2869_v32 }
 0x741   : > { %v1959_v55 = vpop.f32.mrf.mxu1 }
 0x742   : > { %2145 = vmatpush.bf16.msra.mxu2 %v2853_v37 }
 0x744   : > { %v2052_v37 = vpop.permute.xlu1 %2051 }
 0x746   : > { %2146 = vmatpush.bf16.msra.mxu2 %v2837_v43 }
 0x749   : > { %v1961_v56 = vpop.f32.mrf.mxu1 }
 0x74a   : > { %2147 = vmatpush.bf16.msra.mxu2 %v2821_v48 }
 0x74b   : > { %v1985_v57 = vpop.f32.mrf.mxu3 }
 0x753   : > { %v1987_v58 = vpop.f32.mrf.mxu3 }
 0x75b   : > { %v2011_v59 = vpop.f32.mrf.mxu3 }
 0x763   : > { %v2013_v60 = vpop.f32.mrf.mxu3 }
 0x7a9   : > { %v1946_v0 = vpop.f32.mrf.mxu0 }
 0x7aa   : > { %v1998_v1 = vpop.f32.mrf.mxu1  ;;  %v1947_v24 = vadd.f32 %v1946_v0, %v1686_v2 }
 0x7ab   : > { %v1999_v33 = vadd.f32 %v1998_v1, %v1688_v63 }
 0x7ac   : > { %v1960_v27 = vadd.f32 %v1959_v55, %v1947_v24 }
 0x7ad   : > { %v2012_v62 = vadd.f32 %v2011_v59, %v1999_v33 }
 0x7ae   : > { %v2041_v53 = vmul.f32 0.5, %v1960_v27 }
 0x7af   : > { %v1972_v3 = vpop.f32.mrf.mxu2  ;;  %v2071_v28 = vmul.f32 0.5, %v2012_v62 }
 0x7b0   : > { %v1973_v10 = vadd.f32 %v1972_v3, %v1687_v25 }
 0x7b1   : > { %v1948_v11 = vpop.f32.mrf.mxu0 }
 0x7b2   : > { %v1986_v12 = vadd.f32 %v1985_v57, %v1973_v10  ;;  %v2000_v4 = vpop.f32.mrf.mxu1 }
 0x7b4   : > { %3360 = vtanh.f32 %v1986_v12  ;;  %v2042_v45 = vmul.f32 0.5, %v1986_v12 }
 0x7b7   : > { %v1974_v9 = vpop.f32.mrf.mxu2 }
 0x7b9   : > { %v2024_v15 = vpop.f32.mrf.mxu0 }
 0x7ba   : > { %v3361_v17 = vpop.eup %3360  ;;  %v2025_v20 = vadd.f32 %v2024_v15, %v1689_v18 }
 0x7bb   : > { %2056 = vrot.lane.b32.xlu0 %v3361_v17, %s3495_s25 }
 0x7bf   : > { %v2037_v21 = vpop.f32.mrf.mxu2 }
 0x7c0   : > { %v2038_v22 = vadd.f32 %v2037_v21, %v2025_v20 }
 0x7c1   : > { %v2026_v23 = vpop.f32.mrf.mxu0 }
 0x7c2   : > { %3362 = vtanh.f32 %v2038_v22  ;;  %v2072_v55 = vmul.f32 0.5, %v2038_v22 }
 0x7c3   : > { %2081 = vrot.lane.b32.xlu0 %v1623_v16, %s3495_s25  ;;  %3364 = vtanh.f32 %v2041_v53 }
 0x7c4   : > { %3366 = vtanh.f32 %v2071_v28 }
 0x7c7   : > { %v2039_v14 = vpop.f32.mrf.mxu2 }
 0x7c8   : > { %v3363_v26 = vpop.eup %3362 }
 0x7c9   : > { %2086 = vrot.lane.b32.xlu2 %v3363_v26, %s3495_s25  ;;  %v3365_v29 = vpop.eup %3364 }
 0x7ca   : > { %v2045_v30 = vmul.f32 0.5, %v3365_v29  ;;  %v3367_v13 = vpop.eup %3366 }
 0x7cb   : > { %v2075_v34 = vmul.f32 0.5, %v3367_v13 }
 0x7cc   : > { %v2047_v31 = vadd.f32 0.5, %v2045_v30  ;;  %v3358_v30 = vld [vmem:[%s4884_s3] ss:$0 sm:$0xff] }
 0x7cd   : > { %v2077_v36 = vadd.f32 0.5, %v2075_v34  ;;  %v3359_v34 = vld [vmem:[#allocation4] ss:$0 sm:$0xff] }
 0x7ce   : > { %v2054_v7 = vmul.f32 %v2052_v37, %v2047_v31 }
 0x823   : > { %v2087_v35 = vpop.permute.xlu2 %2086 }
 0x824   : > { %v2089_v5 = vmul.f32 %v2087_v35, %v2077_v36 }
 0x82d   : > { %v2057_v32 = vpop.permute.xlu0 %2056 }
 0x82e   : > { %v2059_v8 = vmul.f32 %v2057_v32, %v2047_v31 }
 0x830   : > { %2061 = vrot.lane.b32.xlu1 %v2059_v8, %s3495_s25 }
 0x835   : > { %v2082_v40 = vpop.permute.xlu0 %2081 }
 0x836   : > { %v2084_v41 = vmul.f32 %v2082_v40, %v2077_v36 }
 0x838   : > { %2091 = vrot.lane.b32.xlu1 %v2089_v5, %s3495_s25 }
 0x8a2   : > { %v2062_v38 = vpop.permute.xlu1 %2061 }
 0x8a3   : > { %v2064_v39 = vadd.f32 %v2062_v38, %v2054_v7 }
 0x8a5   : > { %3368 = vtanh.f32 %v2064_v39 }
 0x8aa   : > { %v2092_v42 = vpop.permute.xlu1 %2091 }
 0x8ab   : > { %v3369_v43 = vpop.eup %3368  ;;  %v2094_v6 = vadd.f32 %v2092_v42, %v2084_v41 }
 0x8ac   : > { %2067 = vrot.lane.b32.xlu2 %v3369_v43, %s3495_s25 }
 0x8ad   : > { %3370 = vtanh.f32 %v2094_v6 }
 0x8ae   : > { %3372 = vtanh.f32 %v2042_v45 }
 0x8af   : > { %3374 = vtanh.f32 %v2072_v55 }
 0x8b3   : > { %v3371_v44 = vpop.eup %3370 }
 0x8b4   : > { %2097 = vrot.lane.b32.xlu0 %v3371_v44, %s3495_s25  ;;  %v3373_v46 = vpop.eup %3372 }
 0x8b5   : > { %v2046_v47 = vmul.f32 0.5, %v3373_v46  ;;  %v3375_v56 = vpop.eup %3374 }
 0x8b6   : > { %v2076_v57 = vmul.f32 0.5, %v3375_v56 }
 0x8b7   : > { %v2048_v48 = vadd.f32 0.5, %v2046_v47 }
 0x8b8   : > { %v2078_v58 = vadd.f32 0.5, %v2076_v57 }
 0x906   : > { %v2068_v49 = vpop.permute.xlu2 %2067 }
 0x907   : > { %v2070_v50 = vmul.f32 %v2068_v49, %v2048_v48 }
 0x909   : > { %v2101_v51 = vpack.c.bf16 %v2070_v50, %v2070_v50 }
 0x90b   : > { %v2104_v19 = vunpack.c.l.b16 %v2101_v51 }
 0x90d   : > { %v2105_v54 = vpack.c.b16 %v2104_v19, %v2104_v19 }
 0x90f   : > { %2106 = vrot.lane.b32.xlu2 %v2105_v54, %s3495_s25 }
 0x926   : > { %v2098_v59 = vpop.permute.xlu0 %2097 }
 0x927   : > { %v2100_v60 = vmul.f32 %v2098_v59, %v2078_v58 }
 0x929   : > { %v2102_v0 = vpack.c.bf16 %v2100_v60, %v2100_v60 }
 0x92b   : > { %3002 = vmatmul.msk.bf16.vlgmr.msra.gmra.mxu1 %vm893_vm1, %v2102_v0  ;;  %3003 = vmatmul.msk.bf16.vlgmr.msra.gmra.mxu0 %vm893_vm1, %v2102_v0 }
 0x969   : > { %v2107_v1 = vpop.permute.xlu2 %2106 }
 0x96a   : > { %v2109_v33 = vsel %vm893_vm1, %v4823_v52, %v2107_v1 }
 0x96b   : > { %2122 = vmatmul.bf16.vlgmr.msra.gmra.mxu3 %v2109_v33  ;;  %2148 = vmatmul.bf16.vlgmr.msra.gmra.mxu2 %v2109_v33 }
 0x9a8   : > { %v2136_v25 = vpop.f32.mrf.mxu1  ;;  %v2162_v62 = vpop.f32.mrf.mxu0 }
 0x9b0   : > { %v2138_v3 = vpop.f32.mrf.mxu1  ;;  %v2164_v10 = vpop.f32.mrf.mxu0 }
 0x9ee   : > { %v2123_v11 = vpop.f32.mrf.mxu3  ;;  %v2149_v12 = vpop.f32.mrf.mxu2 }
 0x9ef   : > { %v2150_v4 = vadd.f32 %v2149_v12, %v1689_v18  ;;  %v2124_v52 = vadd.f32 %v2123_v11, %v1688_v63 }
 0x9f1   : > { %v2163_v9 = vadd.f32 %v2162_v62, %v2150_v4  ;;  %v2137_v21 = vadd.f32 %v2136_v25, %v2124_v52 }
 0x9f3   : > { %3376 = vtanh.f32 %v2163_v9  ;;  %v2166_v22 = vmul.f32 0.5, %v2137_v21  ;;  %v2167_v28 = vmul.f32 0.5, %v2163_v9 }
 0x9f5   : > { %3378 = vtanh.f32 %v2166_v22 }
 0x9f6   : > { %v2125_v15 = vpop.f32.mrf.mxu3  ;;  %v2151_v17 = vpop.f32.mrf.mxu2 }
 0x9f9   : > { %v3377_v20 = vpop.eup %3376 }
 0x9fa   : > { %2177 = vrot.lane.b32.xlu1 %v3377_v20, %s3495_s25 }
 0x9fb   : > { %v3379_v16 = vpop.eup %3378 }
 0x9fc   : > { %v2170_v23 = vmul.f32 0.5, %v3379_v16 }
 0x9fe   : > { %v2172_v14 = vadd.f32 0.5, %v2170_v23 }
 0xa00   : > { %v2175_v18 = vmul.f32 %v2172_v14, %v2094_v6 }
 0xa6c   : > { %v2178_v26 = vpop.permute.xlu1 %2177 }
 0xa6d   : > { %v2180_v2 = vmul.f32 %v2178_v26, %v2172_v14 }
 0xa6f   : > { %2182 = vrot.lane.b32.xlu2 %v2180_v2, %s3495_s25 }
 0xac9   : > { %v2183_v24 = vpop.permute.xlu2 %2182 }
 0xaca   : > { %v2185_v27 = vadd.f32 %v2183_v24, %v2175_v18 }
 0xacc   : > { %3380 = vtanh.f32 %v2185_v27 }
 0xacd   : > { %3382 = vtanh.f32 %v2167_v28 }
 0xad2   : > { %v3381_v53 = vpop.eup %3380 }
 0xad3   : > { %2188 = vrot.lane.b32.xlu0 %v3381_v53, %s3495_s25  ;;  %v3383_v61 = vpop.eup %3382 }
 0xad4   : > { %v2171_v63 = vmul.f32 0.5, %v3383_v61 }
 0xad6   : > { %v2173_v29 = vadd.f32 0.5, %v2171_v63 }
 0xb45   : > { %v2189_v31 = vpop.permute.xlu0 %2188 }
 0xb46   : > { %v2191_v13 = vmul.f32 %v2189_v31, %v2173_v29 }
 0xb48   : > { %v2196_v32 = vmul.f32 %v3358_v30, %v2191_v13 }
 0xb4a   : > { %v2197_v8 = vsel %vm893_vm1, %v2196_v32, 0.0 }
 0xb4b   : > { %2198 = vadd.xlane.f32.xlu1 %v2197_v8 }
 0xbbe   : > { %v2199_v35 = vpop.xlane.xlu1 %2198 }
 0xbbf   : > { %v2204_v36 = vadd.f32 %v3359_v34, %v2199_v35 }
 0xbc1   : > { %v2205_v5 = vmul.f32 0.5, %v2204_v36 }
 0xbc3   : > { %3384 = vtanh.f32 %v2205_v5 }
 0xbc9   : > { %v3385_v37 = vpop.eup %3384 }
 0xbca   : > { %v2207_v7 = vmul.f32 0.5, %v3385_v37 }
 0xbcc   : > { %v2208_v38 = vadd.f32 0.5, %v2207_v7 }
 0xbce   : > { %2210 = vst.msk [vmem:[%s4886_s5] sm:$0xff] %vm2209_vm2, %v2208_v38 }
 0xbcf PF: > { %s17_s22 = sadd.s32 1, %s3461_s22   ;;  %s4893_s20 = smov %s3457_s21 }
 0xbd0   : > { %p14_p10 = scmp.ge.s32.totalorder %s17_s22, 5   ;;  %s4894_s21 = smov %s4896_s4 }
 0xbd2   :  { %16 = sbr.rel (!%p14_p10) target bundleno = 3 (0x3), region = 106 }

</bundles_post_ra>
